<compile_context>
chip_gen: v7x
topology: tpu7x:2x2x1
jax: 0.10.0
libtpu: 0.0.40
codegen_flags: <defaults>
</compile_context>

<pallas_src>
import functools

import jax
import jax.numpy as jnp
from jax.experimental import pallas as pl
from jax.experimental.pallas import tpu as pltpu


def _gated_attn_kernel(x_ref, wab_ref, bab_ref, wc_ref, bc_ref, out_ref, *, D):
    """One tile of N rows: gated attention scores for those rows."""
    # In-kernel f32 -> bf16 cast of x (no wrapper-side astype pass over HBM).
    x = x_ref[...].astype(jnp.bfloat16)                          # (TN, L)
    # Fused gate projection: one MXU matmul covering both Linear(L, D) layers.
    ab = (jnp.dot(x, wab_ref[...], preferred_element_type=jnp.float32)
          + bab_ref[...])                                        # (TN, 2D) f32
    a = jnp.tanh(ab[:, :D])                                      # (TN, D)  f32 (EUP)
    b = jax.nn.sigmoid(ab[:, D:])                                # (TN, D)  f32 (EUP)
    gated = (a * b).astype(wc_ref.dtype)                         # (TN, D)  bf16
    # attention_c: Linear(D, n_classes) on the lane-padded output.
    out_ref[...] = (
        jnp.dot(gated, wc_ref[...], preferred_element_type=jnp.float32)
        + bc_ref[...])                                           # (TN, Cp) f32


def attn_net_gated(x, wa, ba, wb, bb, wc, bc, *, tile_n=512, core_parallel=False):
    """Pallas wrapper. x: [N, L] float32. Returns (A [N, C], x)."""
    N, L = x.shape
    D = wa.shape[1]
    C = wc.shape[1]

    # Lane-aligned split of the fused gate projection; a non-128-multiple D
    # would silently insert cross-lane relayout copies on every tile.
    assert D % 128 == 0, f"D={D} must be a multiple of 128 lanes"

    # ---- wrapper-side weight fusion / padding (tiny, one-off) --------------
    wab = jnp.concatenate([wa, wb], axis=1).astype(jnp.bfloat16)   # (L, 2D)
    bab = jnp.concatenate([ba, bb], axis=1).astype(jnp.float32)    # (1, 2D)

    C_pad = pl.cdiv(C, 128) * 128                                  # lane-dense out
    wc_p = jnp.pad(wc.astype(jnp.bfloat16), ((0, 0), (0, C_pad - C)))
    bc_p = jnp.pad(bc.astype(jnp.float32), ((0, 0), (0, C_pad - C)))

    # Tile sizing: big tiles amortize per-step overhead; clamp to ~ceil(N/2)
    # rows (8-sublane granule) so the grid keeps >= 2 steps for megacore
    # sharding even on small bags.  No row padding of x — the ragged last
    # tile is handled by Pallas' edge-block clamping.
    half_rows = ((pl.cdiv(N, 2) + 7) // 8) * 8
    tn = max(8, min(tile_n, half_rows))
    n_tiles = pl.cdiv(N, tn)

    kernel = functools.partial(_gated_attn_kernel, D=D)

    semantics = (pltpu.CORE_PARALLEL,) if core_parallel else ("parallel",)

    A_full = pl.pallas_call(
        kernel,
        out_shape=jax.ShapeDtypeStruct((N, C_pad), jnp.float32),
        grid_spec=pltpu.PrefetchScalarGridSpec(
            num_scalar_prefetch=0,
            grid=(n_tiles,),
            in_specs=[
                pl.BlockSpec((tn, L), lambda i: (i, 0)),         # x tile (f32)
                # Grid-invariant operands (constant index_map => fetched once,
                # VMEM-resident across all N-tiles).
                pl.BlockSpec((L, 2 * D), lambda i: (0, 0)),      # Wa|Wb fused
                pl.BlockSpec((1, 2 * D), lambda i: (0, 0)),      # ba|bb fused
                pl.BlockSpec((D, C_pad), lambda i: (0, 0)),      # Wc (padded)
                pl.BlockSpec((1, C_pad), lambda i: (0, 0)),      # bc (padded)
            ],
            out_specs=pl.BlockSpec((tn, C_pad), lambda i: (i, 0)),
        ),
        compiler_params=pltpu.CompilerParams(
            dimension_semantics=semantics,       # shard N-tiles across cores
            vmem_limit_bytes=32 * 1024 * 1024,   # raise v5e default; <= v7x 64 MiB
        ),
    )(x, wab, bab, wc_p, bc_p)

    A = A_full[:, :C]
    # module returns (A, x): attention logits plus the untouched input.
    return A, x


def init_params(key, L, D, C):
    """Deterministic synthetic parameters (nn.Linear-shaped, stored transposed
    for row-major matmul)."""
    k1, k2, k3, k4, k5, k6 = jax.random.split(key, 6)
    scale_a = 1.0 / jnp.sqrt(L)
    scale_c = 1.0 / jnp.sqrt(D)
    wa = jax.random.uniform(k1, (L, D), jnp.float32, -scale_a, scale_a)
    ba = jax.random.uniform(k2, (1, D), jnp.float32, -scale_a, scale_a)
    wb = jax.random.uniform(k3, (L, D), jnp.float32, -scale_a, scale_a)
    bb = jax.random.uniform(k4, (1, D), jnp.float32, -scale_a, scale_a)
    wc = jax.random.uniform(k5, (D, C), jnp.float32, -scale_c, scale_c)
    bc = jax.random.uniform(k6, (1, C), jnp.float32, -scale_c, scale_c)
    return wa, ba, wb, bb, wc, bc


if __name__ == "__main__":
    # CLAM defaults: L=1024 in-features, D=256 hidden, n_classes=1.
    # N=300 instances exercises the ragged (non-tile-multiple) edge block and
    # the >=2-grid-step clamp (tn=152 -> 2 steps).
    N, L, D, C = 300, 1024, 256, 1

    key = jax.random.PRNGKey(0)
    kx, kp = jax.random.split(key)
    x = jax.random.normal(kx, (N, L), jnp.float32)
    wa, ba, wb, bb, wc, bc = init_params(kp, L, D, C)

    A, x_out = attn_net_gated(x, wa, ba, wb, bb, wc, bc)
    A = jax.block_until_ready(A)
    x_out = jax.block_until_ready(x_out)
    assert A.shape == (N, C)

    # Reference matching the kernel's bf16-MXU-input / f32-accumulate math.
    f32 = lambda t: t.astype(jnp.bfloat16).astype(jnp.float32)
    a_ref = jnp.tanh(f32(x) @ f32(wa) + ba)
    b_ref = jax.nn.sigmoid(f32(x) @ f32(wb) + bb)
    A_ref = f32(a_ref * b_ref) @ f32(wc) + bc
    assert jnp.allclose(A, A_ref, atol=5e-3, rtol=5e-3), \
        float(jnp.max(jnp.abs(A - A_ref)))

    # Pure-f32 reference sanity check (loose tolerance: bf16 MXU inputs).
    A_f32 = (jnp.tanh(x @ wa + ba) * jax.nn.sigmoid(x @ wb + bb)) @ wc + bc
    assert jnp.allclose(A, A_f32, atol=5e-2, rtol=5e-2)

    assert jnp.array_equal(x_out, x)

    print("KERNEL_OK")
</pallas_src>

<mosaic_0001>
module attributes {stable_mosaic.version = 11 : i64} {
  func.func @_gated_attn_kernel(%arg0: i32, %arg1: memref<152x1024xf32, #tpu.memory_space<vmem>>, %arg2: memref<1024x512xbf16, #tpu.memory_space<vmem>>, %arg3: memref<1x512xf32, #tpu.memory_space<vmem>>, %arg4: memref<256x128xbf16, #tpu.memory_space<vmem>>, %arg5: memref<1x128xf32, #tpu.memory_space<vmem>>, %arg6: memref<152x128xf32, #tpu.memory_space<vmem>>) attributes {dimension_semantics = [#tpu.dimension_semantics<parallel>], iteration_bounds = array<i64: 2>, scalar_prefetch = 0 : i64, scratch_operands = 0 : i64, tpu.core_type = #tpu.core_type<tc>, window_params = [{transform_indices = @transform_0, window_bounds = array<i64: 152, 1024>}, {pipeline_mode = #tpu.pipeline_mode<synchronous>, transform_indices = @transform_1, window_bounds = array<i64: 1024, 512>}, {pipeline_mode = #tpu.pipeline_mode<synchronous>, transform_indices = @transform_2, window_bounds = array<i64: 1, 512>}, {pipeline_mode = #tpu.pipeline_mode<synchronous>, transform_indices = @transform_3, window_bounds = array<i64: 256, 128>}, {pipeline_mode = #tpu.pipeline_mode<synchronous>, transform_indices = @transform_4, window_bounds = array<i64: 1, 128>}, {transform_indices = @transform_5, window_bounds = array<i64: 152, 128>}]} {
    %c0 = arith.constant 0 : index
    %c0_0 = arith.constant 0 : index
    %0 = vector.load %arg1[%c0, %c0_0] : memref<152x1024xf32, #tpu.memory_space<vmem>>, vector<152x1024xf32>
    %1 = arith.truncf %0 : vector<152x1024xf32> to vector<152x1024xbf16>
    %c0_1 = arith.constant 0 : index
    %c0_2 = arith.constant 0 : index
    %2 = vector.load %arg2[%c0_1, %c0_2] : memref<1024x512xbf16, #tpu.memory_space<vmem>>, vector<1024x512xbf16>
    %cst = arith.constant dense<0.000000e+00> : vector<152x512xf32>
    %3 = tpu.matmul %1, %2, %cst {dimension_numbers = #tpu.dot_dimension_numbers<[1], [0], [0], [1], [0, 0, 1, 1], [], []>} : vector<152x1024xbf16>, vector<1024x512xbf16>, vector<152x512xf32> -> vector<152x512xf32>
    %c0_3 = arith.constant 0 : index
    %c0_4 = arith.constant 0 : index
    %4 = vector.load %arg3[%c0_3, %c0_4] : memref<1x512xf32, #tpu.memory_space<vmem>>, vector<1x512xf32>
    %5 = vector.broadcast %4 : vector<1x512xf32> to vector<152x512xf32>
    %6 = arith.addf %3, %5 : vector<152x512xf32>
    %7 = vector.extract_strided_slice %6 {offsets = [0, 0], sizes = [152, 256], strides = [1, 1]} : vector<152x512xf32> to vector<152x256xf32>
    %8 = math.tanh %7 : vector<152x256xf32>
    %9 = vector.extract_strided_slice %6 {offsets = [0, 256], sizes = [152, 256], strides = [1, 1]} : vector<152x512xf32> to vector<152x256xf32>
    %10 = arith.negf %9 : vector<152x256xf32>
    %11 = math.exp %10 : vector<152x256xf32>
    %cst_5 = arith.constant 1.000000e+00 : f32
    %12 = vector.broadcast %cst_5 : f32 to vector<152x256xf32>
    %13 = arith.addf %12, %11 : vector<152x256xf32>
    %14 = arith.divf %12, %13 : vector<152x256xf32>
    %15 = arith.mulf %8, %14 : vector<152x256xf32>
    %16 = arith.truncf %15 : vector<152x256xf32> to vector<152x256xbf16>
    %c0_6 = arith.constant 0 : index
    %c0_7 = arith.constant 0 : index
    %17 = vector.load %arg4[%c0_6, %c0_7] : memref<256x128xbf16, #tpu.memory_space<vmem>>, vector<256x128xbf16>
    %cst_8 = arith.constant dense<0.000000e+00> : vector<152x128xf32>
    %18 = tpu.matmul %16, %17, %cst_8 {dimension_numbers = #tpu.dot_dimension_numbers<[1], [0], [0], [1], [0, 0, 1, 1], [], []>} : vector<152x256xbf16>, vector<256x128xbf16>, vector<152x128xf32> -> vector<152x128xf32>
    %c0_9 = arith.constant 0 : index
    %c0_10 = arith.constant 0 : index
    %19 = vector.load %arg5[%c0_9, %c0_10] : memref<1x128xf32, #tpu.memory_space<vmem>>, vector<1x128xf32>
    %20 = vector.broadcast %19 : vector<1x128xf32> to vector<152x128xf32>
    %21 = arith.addf %18, %20 : vector<152x128xf32>
    %c0_11 = arith.constant 0 : index
    %c0_12 = arith.constant 0 : index
    %22 = vector.load %arg6[%c0_11, %c0_12] : memref<152x128xf32, #tpu.memory_space<vmem>>, vector<152x128xf32>
    tpu.vector_store %arg6[%c0_11, %c0_12], %21 {strides = array<i32>} : memref<152x128xf32, #tpu.memory_space<vmem>>, vector<152x128xf32>,
    return
  }
  func.func @transform_0(%arg0: i32) -> (i32, i32) {
    %c0_i32 = arith.constant 0 : i32
    %c0_i32_0 = arith.constant 0 : i32
    return %arg0, %c0_i32 : i32, i32
  }
  func.func @transform_1(%arg0: i32) -> (i32, i32) {
    %c0_i32 = arith.constant 0 : i32
    %c0_i32_0 = arith.constant 0 : i32
    %c0_i32_1 = arith.constant 0 : i32
    return %c0_i32, %c0_i32_0 : i32, i32
  }
  func.func @transform_2(%arg0: i32) -> (i32, i32) {
    %c0_i32 = arith.constant 0 : i32
    %c0_i32_0 = arith.constant 0 : i32
    %c0_i32_1 = arith.constant 0 : i32
    return %c0_i32, %c0_i32_0 : i32, i32
  }
  func.func @transform_3(%arg0: i32) -> (i32, i32) {
    %c0_i32 = arith.constant 0 : i32
    %c0_i32_0 = arith.constant 0 : i32
    %c0_i32_1 = arith.constant 0 : i32
    return %c0_i32, %c0_i32_0 : i32, i32
  }
  func.func @transform_4(%arg0: i32) -> (i32, i32) {
    %c0_i32 = arith.constant 0 : i32
    %c0_i32_0 = arith.constant 0 : i32
    %c0_i32_1 = arith.constant 0 : i32
    return %c0_i32, %c0_i32_0 : i32, i32
  }
  func.func @transform_5(%arg0: i32) -> (i32, i32) {
    %c0_i32 = arith.constant 0 : i32
    %c0_i32_0 = arith.constant 0 : i32
    return %arg0, %c0_i32 : i32, i32
  }
}

</mosaic_0001>

<bundles_post_ra>
// kernel: tpu_custom_call.1
= control target key start
LH: loop header
LB: loop body
LE: loop exit
PB: predicated region body
PF: predicated region fallthrough
CT: control target
= control target key end

     0   :  { %10 = vsyncpa [#allocation3], 0  ;;  %s6303_s0 = inlined_call_operand.hbm [shape: f32[300,1024], index: 0, kind: input, shape index: {}]   ;;  %s6304_s1 = inlined_call_operand.hbm [shape: bf16[1024,512], index: 1, kind: input, shape index: {}]   ;;  %s6305_s2 = inlined_call_operand.hbm [shape: f32[1,512], index: 2, kind: input, shape index: {}]   ;;  %s6306_s3 = inlined_call_operand.hbm [shape: bf16[256,128], index: 3, kind: input, shape index: {}]   ;;  %s6307_s4 = inlined_call_operand.hbm [shape: f32[1,128], index: 4, kind: input, shape index: {}]   ;;  %s6308_s5 = inlined_call_operand.hbm [shape: f32[300,128], index: 5, kind: output, shape index: {}]  }
   0x1   :  { %12 = vsyncpa [#allocation3 + $0x1], 0 }
   0x2   :  { %13 = vsyncpa [#allocation6], 0 }
   0x3   :  { %14 = vsyncpa [#allocation9], 0 }
   0x4   :  { %15 = vsyncpa [#allocation4], 0 }
   0x5   :  { %17 = vsyncpa [#allocation4 + $0x1], 0  ;;  %s5580_s18 = smov 0   ;;  %s5582_s19 = smov 0  }
   0x6   :  { %s5584_s20 = smov 0   ;;  %s5586_s21 = smov 0  }
   0x7 LB: > { %s5601_s22 = sadd.s32 4294967295, %s5535_s21   ;;  %s3854_s23 = sadd.s32 4294967294, %s5535_s21   ;;  %s5535_s21 = sphi %s5586_s21, %s6331_s21   ;;  %s5531_s20 = sphi %s5584_s20, %s6330_s20   ;;  %s5527_s19 = sphi %s5582_s19, %s6329_s19   ;;  %s5523_s18 = sphi %s5580_s18, %s6328_s18  }
   0x8   : > { %p43_p0 = scmp.ne.s32.totalorder %s5527_s19, %s5523_s18  ;;  %p6309_p1 = scmp.eq.s32.totalorder %s5601_s22, 0 }
   0x9   : > { %p157_p3 = scmp.eq.s32.totalorder %s3854_s23, 1  ;;  %p3855_p5 = scmp.ge.s32.totalorder %s5535_s21, 1 }
   0xa   : > { %p5610_p4 = por %p6309_p1, %p43_p0  ;;  %p164_p7 = scmp.lt.s32.totalorder %s5535_s21, 3 }
   0xb   : > { %p5615_p6 = por %p157_p3, %p43_p0  ;;  %s5537_s27 = smov [#allocation5]  }
   0xc   : > { %s6312_s24 = scalar_select %p5610_p4, 1, 0 }
   0xd   : > { %s6313_s25 = scalar_select %p5615_p6, 1, 0 }
   0xe   : > { %p5620_p8 = pnand %p3855_p5, %p164_p7  ;;  %s176_s28 = sshll.u32 %s5537_s27, 4  ;;  %s5624_s28 = int_to_ptr.vmem [resolvable:$true] %s176_s28 }
   0xf   : > { %s5538_s30 = smov [#allocation8]   ;;  %s5319_s9 = scalar_lea.hbm %s6304_s1, 32768 }
  0x10   : > { %s6314_s26 = scalar_select %p5620_p8, 1, 0 }
  0x11   : > { %p4617_p9 = pneg %p5620_p8  ;;  %s200_s6 = sshll.u32 %s5538_s30, 4  ;;  %s5635_s6 = int_to_ptr.vmem [resolvable:$true] %s200_s6 }
  0x12   : > { %p5320_p12 = scmp.ne.s32.totalorder %s6304_s1, %s5319_s9  ;;  %p5326_p5 = scmp.lt.u32.totalorder %s5319_s9, %s6304_s1 }
  0x13   : > { %p5631_p11 = pnand %p4617_p9, %p6309_p1 }
  0x15   : > { %p5645_p13 = pneg %p5631_p11 }
  0x17   : > { %p5322_p0 = pnand %p5645_p13, %p5320_p12 }
  0x19   : > { %p5323_p3 = pneg %p5322_p0 }
  0x1b   : > { %p5328_p7 = pnand %p5326_p5, %p5323_p3 }
  0x1d   : > { %5331 = shalt.err (!%p5328_p7)
}
  0x1e   : > { %s5332_s15 = scalar_lea.vmem %s5624_s28, 32768  ;;  %p5340_p2 = scmp.lt.s32.totalorder %s5624_s28, %s5624_s28 }
  0x1f   : > { %p5333_p9 = scmp.ne.s32.totalorder %s5624_s28, %s5332_s15  ;;  %p5341_p6 = scmp.lt.s32.totalorder %s5332_s15, %s5332_s15 }
  0x21   : > { %p5335_p10 = pnand %p5333_p9, %p5645_p13  ;;  %p5342_p12 = por %p5341_p6, %p5340_p2 }
  0x23   : > { %p5336_p1 = pneg %p5335_p10 }
  0x25   : > { %p5343_p0 = pnand %p5342_p12, %p5336_p1 }
  0x27   : > { %5346 = shalt.err (!%p5343_p0)
}
  0x28   : > { %s5539_s16 = smov 256   ;;  %s5540_s17 = smov 16  }
  0x29   : > { %4620 = dma.hbm_to_vmem [thread:$0]  (!%p5631_p11), %s6304_s1, 32768, %s5624_s28, [#allocation6], %s5539_s16, %s5539_s16, %s5540_s17  }
  0x2a   : > { %s5347_s8 = scalar_lea.hbm %s6306_s3, 2048 }
  0x2b   : > { %p5348_p2 = scmp.ne.s32.totalorder %s6306_s3, %s5347_s8  ;;  %p5354_p10 = scmp.lt.u32.totalorder %s5347_s8, %s6306_s3 }
  0x2d   : > { %p5350_p1 = pnand %p5348_p2, %p5645_p13 }
  0x2f   : > { %p5351_p6 = pneg %p5350_p1 }
  0x31   : > { %p5356_p3 = pnand %p5354_p10, %p5351_p6 }
  0x33   : > { %5359 = shalt.err (!%p5356_p3)
}
  0x34   : > { %s5360_s28 = scalar_lea.vmem %s5635_s6, 2048  ;;  %p5368_p12 = scmp.lt.s32.totalorder %s5635_s6, %s5635_s6 }
  0x35   : > { %p5361_p5 = scmp.ne.s32.totalorder %s5635_s6, %s5360_s28  ;;  %p5369_p0 = scmp.lt.s32.totalorder %s5360_s28, %s5360_s28 }
  0x37   : > { %p5363_p7 = pnand %p5361_p5, %p5645_p13  ;;  %p5370_p2 = por %p5369_p0, %p5368_p12 }
  0x39   : > { %p5364_p9 = pneg %p5363_p7 }
  0x3b   : > { %p5371_p1 = pnand %p5370_p2, %p5364_p9 }
  0x3d   : > { %5374 = shalt.err (!%p5371_p1)
}
  0x3e   : > { %s5541_s14 = smov 64   ;;  %s5542_s15 = smov 4  }
  0x3f   : > { %4626 = dma.hbm_to_vmem [thread:$0]  (!%p5631_p11), %s6306_s3, 2048, %s5635_s6, [#allocation9], %s5541_s14, %s5541_s14, %s5542_s15  }
  0x40   : > { %s5543_s23 = smov [#allocation7]   ;;  %s5544_s30 = smov [#allocation10]  }
  0x41   : > { %s190_s27 = sshll.u32 %s5543_s23, 4  ;;  %s214_s7 = sshll.u32 %s5544_s30, 4  ;;  %s191_s27 = int_to_ptr.vmem [resolvable:$true] %s190_s27  ;;  %s5691_s7 = int_to_ptr.vmem [resolvable:$true] %s214_s7 }
  0x42   : > { %s5375_s10 = scalar_lea.hbm %s6305_s2, 64 }
  0x43   : > { %p5376_p6 = scmp.ne.s32.totalorder %s6305_s2, %s5375_s10  ;;  %p5382_p5 = scmp.lt.u32.totalorder %s5375_s10, %s6305_s2 }
  0x45   : > { %p5378_p10 = pnand %p5376_p6, %p5645_p13 }
  0x47   : > { %p5379_p3 = pneg %p5378_p10 }
  0x49   : > { %p5384_p7 = pnand %p5382_p5, %p5379_p3 }
  0x4b   : > { %5387 = shalt.err (!%p5384_p7)
}
  0x4c   : > { %s5388_s15 = scalar_lea.vmem %s191_s27, 64  ;;  %p5396_p2 = scmp.lt.s32.totalorder %s191_s27, %s191_s27 }
  0x4d   : > { %p5389_p9 = scmp.ne.s32.totalorder %s191_s27, %s5388_s15  ;;  %p5397_p1 = scmp.lt.s32.totalorder %s5388_s15, %s5388_s15 }
  0x4f   : > { %p5391_p12 = pnand %p5389_p9, %p5645_p13  ;;  %p5398_p4 = por %p5397_p1, %p5396_p2 }
  0x51   : > { %p5392_p0 = pneg %p5391_p12 }
  0x53   : > { %p5399_p8 = pnand %p5398_p4, %p5392_p0 }
  0x55   : > { %5402 = shalt.err (!%p5399_p8)
}
  0x56   : > { %4623 = dma.hbm_to_vmem [thread:$0]  (!%p5631_p11), %s6305_s2, 64, %s191_s27, [#allocation6]  }
  0x57   : > { %s5403_s8 = scalar_lea.hbm %s6307_s4, 16 }
  0x58   : > { %p5404_p6 = scmp.ne.s32.totalorder %s6307_s4, %s5403_s8  ;;  %p5410_p4 = scmp.lt.u32.totalorder %s5403_s8, %s6307_s4 }
  0x5a   : > { %p5406_p10 = pnand %p5404_p6, %p5645_p13 }
  0x5c   : > { %p5407_p3 = pneg %p5406_p10 }
  0x5e   : > { %p5412_p8 = pnand %p5410_p4, %p5407_p3 }
  0x60   : > { %5415 = shalt.err (!%p5412_p8)
}
  0x61   : > { %s5416_s27 = scalar_lea.vmem %s5691_s7, 16  ;;  %s5423_s28 = scalar_lea.vmem %s5691_s7, 32 }
  0x62   : > { %p5417_p5 = scmp.ne.s32.totalorder %s5691_s7, %s5416_s27  ;;  %p5424_p12 = scmp.lt.s32.totalorder %s5691_s7, %s5691_s7 }
  0x63   : > { %p5425_p0 = scmp.lt.s32.totalorder %s5423_s28, %s5416_s27 }
  0x64   : > { %p5419_p7 = pnand %p5417_p5, %p5645_p13 }
  0x65   : > { %p5426_p2 = por %p5425_p0, %p5424_p12 }
  0x66   : > { %p5420_p9 = pneg %p5419_p7 }
  0x68   : > { %p5427_p1 = pnand %p5426_p2, %p5420_p9 }
  0x6a   : > { %5430 = shalt.err (!%p5427_p1)
}
  0x6b   : > { %4629 = dma.hbm_to_vmem [thread:$0]  (!%p5631_p11), %s6307_s4, 16, %s5691_s7, [#allocation9]  }
  0x6c   : > { %s5736_s12 = sadd.s32 1, %s5535_s21   ;;  %s30_s16 = sadd.s32 1, %s5531_s20 }
  0x6d   : > { %s27_s29 = ssub.s32 %s5535_s21, %s5736_s12  ;;  %p37_p6 = scmp.ne.s32.totalorder %s5531_s20, %s5527_s19 }
  0x6e   : > { %p28_p13 = scmp.eq.s32.totalorder %s27_s29, 0  ;;  %p38_p10 = scmp.eq.s32.totalorder %s5535_s21, 0 }
  0x6f   : > { %p6317_p4 = scmp.eq.s32.totalorder %s5601_s22, 1  ;;  %p4642_p5 = scmp.lt.s32.totalorder %s5535_s21, 2 }
  0x70   : > { %s5745_s17 = scalar_select %p28_p13, %s5531_s20, %s30_s16  }
  0x71   : > { %p39_p3 = por %p38_p10, %p37_p6  ;;  %p5749_p8 = por %p6317_p4, %p37_p6 }
  0x72   : > { %s225_s30 = sand.u32 1, %s5531_s20   ;;  %s4185_s7 = smul.u32 19456, %s5535_s21 }
  0x73   : > { %s4594_s8 = smul.u32 1216, %s225_s30  ;;  %p5756_p11 = pnand %p4642_p5, %p39_p3 }
  0x74   : > { %s5763_s13 = scalar_lea.hbm %s6303_s0, %s4185_s7  ;;  %s5767_s6 = scalar_lea.sflag [#allocation3], %s225_s30 }
  0x75   : > { %s229_s27 = scalar_lea.vmem [#allocation2], %s4594_s8  ;;  %s5431_s15 = scalar_lea.hbm %s5763_s13, 19456 }
  0x76   : > { %s237_s28 = sshll.u32 %s229_s27, 4  ;;  %p5432_p7 = scmp.ne.s32.totalorder %s5763_s13, %s5431_s15  ;;  %s5765_s28 = int_to_ptr.vmem [resolvable:$true] %s237_s28 }
  0x77   : > { %p5433_p9 = pneg %p5756_p11  ;;  %s5436_s7 = scalar_lea.hbm %s6303_s0, 38912 }
  0x78   : > { %p5437_p2 = scmp.lt.u32.totalorder %s5763_s13, %s6303_s0  ;;  %p5438_p1 = scmp.lt.u32.totalorder %s5436_s7, %s5431_s15 }
  0x79   : > { %p5434_p12 = pnand %p5433_p9, %p5432_p7  ;;  %p5440_p6 = scmp.lt.u32.totalorder %s5431_s15, %s5763_s13 }
  0x7a   : > { %p5439_p13 = por %p5438_p1, %p5437_p2 }
  0x7b   : > { %p5435_p0 = pneg %p5434_p12 }
  0x7c   : > { %p5441_p10 = por %p5440_p6, %p5439_p13 }
  0x7e   : > { %p5442_p3 = pnand %p5441_p10, %p5435_p0 }
  0x80   : > { %5445 = shalt.err (!%p5442_p3)
}
  0x81   : > { %s5446_s30 = scalar_lea.vmem %s5765_s28, 19456  ;;  %s5545_s8 = smov [#allocation2]  }
  0x82   : > { %p5447_p4 = scmp.ne.s32.totalorder %s5765_s28, %s5446_s30  ;;  %s5451_s27 = sshll.u32 %s5545_s8, 4  ;;  %s5452_s27 = int_to_ptr.vmem [resolvable:$false] %s5451_s27 }
  0x83   : > { %s5453_s29 = scalar_lea.vmem %s5452_s27, 38912  ;;  %p5454_p12 = scmp.lt.s32.totalorder %s5765_s28, %s5452_s27 }
  0x84   : > { %p5449_p5 = pnand %p5447_p4, %p5433_p9  ;;  %p5455_p2 = scmp.lt.s32.totalorder %s5453_s29, %s5446_s30 }
  0x86   : > { %p5450_p7 = pneg %p5449_p5  ;;  %p5456_p1 = por %p5455_p2, %p5454_p12 }
  0x88   : > { %p5457_p13 = pnand %p5456_p1, %p5450_p7 }
  0x8a   : > { %5460 = shalt.err (!%p5457_p13)
}
  0x8b   : > { %s5546_s15 = smov 1024   ;;  %p6320_p9 = scmp.ne.s32.totalorder %s6314_s26, 0 }
  0x8c   : > { %4633 = dma.hbm_to_vmem [thread:$0]  (!%p5756_p11), %s5763_s13, 19456, %s5765_s28, %s5767_s6, %s5546_s15, %s5546_s15, %s5541_s14  }
  0x8d   : > { %249 = sbr.rel (%p6320_p9) target bundleno = 1049 (0x419), region = 40  ;;  %s5799_s16 = sand.u32 (!%p6320_p9), 1, %s5527_s19  }
  0x8e   : > { %s4595_s7 = smul.u32 (!%p6320_p9), 1216, %s5799_s16  ;;  %s252_s10 = scalar_lea.sflag (!%p6320_p9), [#allocation3], %s5799_s16 }
  0x8f   : > { %p6321_p0 = scmp.ne.s32.totalorder (!%p6320_p9), %s6312_s24, 0 }
  0x90   : > { %s5803_s11 = scalar_lea.vmem (!%p6320_p9), [#allocation2], %s4595_s7 }
  0x94   : > { %5506 = dma.done.wait (%p6321_p0), %s252_s10, 19456  }
  0x95   : > { %5508 = vsyncadd (%p6321_p0), %s252_s10, 4294947840  ;;  %p6322_p11 = scmp.eq.s32.totalorder %s5601_s22, 0 }
  0x97   : > { %5510 = dma.done.wait (%p6322_p11), [#allocation6], 32832   ;;  %p6323_p6 = pmov %p6322_p11 }
  0x99   : > { %5512 = vsyncadd (%p6323_p6), [#allocation6], 4294934464  ;;  %p6324_p10 = pmov %p6323_p6 }
  0x9a   : > { %p6325_p3 = pmov %p6323_p6 }
  0x9b   : > { %5514 = dma.done.wait (%p6324_p10), [#allocation9], 2064  }
  0x9c   : > { %5516 = vsyncadd (%p6325_p3), [#allocation9], 4294965232  ;;  %v4691_v0 = vld [vmem:[#allocation5 + $0x4] ss:$16 sps:$4 sm:$0xff]   ;;  %v4693_v1 = vld [vmem:[#allocation5 + $0xc] ss:$16 sps:$4 sm:$0xff]  }
  0x9d   : > { %2091 = vmatprep.subr.bf16.mxu0 %v4691_v0  ;;  %v4695_v2 = vld [vmem:[#allocation5] ss:$16 sps:$4 sm:$0xff]   ;;  %v4696_v3 = vld [vmem:[#allocation5 + $0x8] ss:$16 sps:$4 sm:$0xff]   ;;  %2615 = vmatprep.subr.bf16.mxu1 %v4693_v1  ;;  %v4697_v4 = vld [vmem:[#allocation5 + $0x24] ss:$16 sps:$4 sm:$0xff]  }
  0x9e   : > { %2092 = vmatpush1.bf16.msra.mxu0 %v4695_v2  ;;  %2616 = vmatpush1.bf16.msra.mxu1 %v4696_v3  ;;  %v4699_v5 = vld [vmem:[#allocation5 + $0x2c] ss:$16 sps:$4 sm:$0xff]   ;;  %v4701_v6 = vld [vmem:[#allocation5 + $0x20] ss:$16 sps:$4 sm:$0xff]   ;;  %v4702_v7 = vld [vmem:[#allocation5 + $0x28] ss:$16 sps:$4 sm:$0xff]  }
  0x9f   : > { %2093 = vmatprep.subr.bf16.mxu0 %v4697_v4  ;;  %2617 = vmatprep.subr.bf16.mxu1 %v4699_v5  ;;  %v4703_v8 = vld [vmem:[#allocation5 + $0x44] ss:$16 sps:$4 sm:$0xff]   ;;  %v4705_v9 = vld [vmem:[#allocation5 + $0x4c] ss:$16 sps:$4 sm:$0xff]   ;;  %v4707_v10 = vld [vmem:[#allocation5 + $0x40] ss:$16 sps:$4 sm:$0xff]  }
  0xa0   : > { %v4708_v11 = vld [vmem:[#allocation5 + $0x48] ss:$16 sps:$4 sm:$0xff]   ;;  %v4709_v12 = vld [vmem:[#allocation5 + $0x64] ss:$16 sps:$4 sm:$0xff]   ;;  %v4711_v13 = vld [vmem:[#allocation5 + $0x6c] ss:$16 sps:$4 sm:$0xff]  }
  0xa1   : > { %v4713_v14 = vld [vmem:[#allocation5 + $0x60] ss:$16 sps:$4 sm:$0xff]   ;;  %v4714_v15 = vld [vmem:[#allocation5 + $0x68] ss:$16 sps:$4 sm:$0xff]   ;;  %v4715_v16 = vld [vmem:[#allocation5 + $0x84] ss:$16 sps:$4 sm:$0xff]  }
  0xa2   : > { %2094 = vmatpush1.bf16.msra.mxu0 %v4701_v6  ;;  %2618 = vmatpush1.bf16.msra.mxu1 %v4702_v7  ;;  %v4717_v17 = vld [vmem:[#allocation5 + $0x8c] ss:$16 sps:$4 sm:$0xff]   ;;  %v4719_v18 = vld [vmem:[#allocation5 + $0x80] ss:$16 sps:$4 sm:$0xff]   ;;  %v4720_v19 = vld [vmem:[#allocation5 + $0x88] ss:$16 sps:$4 sm:$0xff]  }
  0xa3   : > { %2095 = vmatprep.subr.bf16.mxu0 %v4703_v8  ;;  %2619 = vmatprep.subr.bf16.mxu1 %v4705_v9  ;;  %v4721_v20 = vld [vmem:[#allocation5 + $0xa4] ss:$16 sps:$4 sm:$0xff]   ;;  %v4723_v21 = vld [vmem:[#allocation5 + $0xac] ss:$16 sps:$4 sm:$0xff]   ;;  %v4725_v22 = vld [vmem:[#allocation5 + $0xa0] ss:$16 sps:$4 sm:$0xff]  }
  0xa4   : > { %v4726_v23 = vld [vmem:[#allocation5 + $0xa8] ss:$16 sps:$4 sm:$0xff]   ;;  %v4727_v24 = vld [vmem:[#allocation5 + $0xc4] ss:$16 sps:$4 sm:$0xff]   ;;  %v4729_v25 = vld [vmem:[#allocation5 + $0xcc] ss:$16 sps:$4 sm:$0xff]  }
  0xa5   : > { %v4731_v26 = vld [vmem:[#allocation5 + $0xc0] ss:$16 sps:$4 sm:$0xff]   ;;  %v4732_v27 = vld [vmem:[#allocation5 + $0xc8] ss:$16 sps:$4 sm:$0xff]   ;;  %v4733_v28 = vld [vmem:[#allocation5 + $0xe4] ss:$16 sps:$4 sm:$0xff]  }
  0xa6   : > { %2096 = vmatpush1.bf16.msra.mxu0 %v4707_v10  ;;  %2620 = vmatpush1.bf16.msra.mxu1 %v4708_v11  ;;  %v4735_v29 = vld [vmem:[#allocation5 + $0xec] ss:$16 sps:$4 sm:$0xff]   ;;  %v4737_v30 = vld [vmem:[#allocation5 + $0xe0] ss:$16 sps:$4 sm:$0xff]   ;;  %v4738_v31 = vld [vmem:[#allocation5 + $0xe8] ss:$16 sps:$4 sm:$0xff]  }
  0xa7   : > { %2097 = vmatprep.subr.bf16.mxu0 %v4709_v12  ;;  %2621 = vmatprep.subr.bf16.mxu1 %v4711_v13  ;;  %v4739_v32 = vld [vmem:[#allocation5 + $0x104] ss:$16 sps:$4 sm:$0xff]   ;;  %v4741_v33 = vld [vmem:[#allocation5 + $0x10c] ss:$16 sps:$4 sm:$0xff]   ;;  %v4743_v34 = vld [vmem:[#allocation5 + $0x100] ss:$16 sps:$4 sm:$0xff]  }
  0xa8   : > { %v4744_v35 = vld [vmem:[#allocation5 + $0x108] ss:$16 sps:$4 sm:$0xff]   ;;  %v4745_v36 = vld [vmem:[#allocation5 + $0x124] ss:$16 sps:$4 sm:$0xff]   ;;  %v4747_v37 = vld [vmem:[#allocation5 + $0x12c] ss:$16 sps:$4 sm:$0xff]  }
  0xa9   : > { %v4749_v38 = vld [vmem:[#allocation5 + $0x120] ss:$16 sps:$4 sm:$0xff]   ;;  %v4750_v39 = vld [vmem:[#allocation5 + $0x128] ss:$16 sps:$4 sm:$0xff]   ;;  %v4751_v40 = vld [vmem:[#allocation5 + $0x144] ss:$16 sps:$4 sm:$0xff]  }
  0xaa   : > { %2098 = vmatpush1.bf16.msra.mxu0 %v4713_v14  ;;  %2622 = vmatpush1.bf16.msra.mxu1 %v4714_v15  ;;  %v4753_v41 = vld [vmem:[#allocation5 + $0x14c] ss:$16 sps:$4 sm:$0xff]   ;;  %v4755_v42 = vld [vmem:[#allocation5 + $0x140] ss:$16 sps:$4 sm:$0xff]   ;;  %v4756_v43 = vld [vmem:[#allocation5 + $0x148] ss:$16 sps:$4 sm:$0xff]  }
  0xab   : > { %2099 = vmatprep.subr.bf16.mxu0 %v4715_v16  ;;  %2623 = vmatprep.subr.bf16.mxu1 %v4717_v17  ;;  %v4757_v44 = vld [vmem:[#allocation5 + $0x164] ss:$16 sps:$4 sm:$0xff]   ;;  %v4759_v45 = vld [vmem:[#allocation5 + $0x16c] ss:$16 sps:$4 sm:$0xff]   ;;  %v4761_v47 = vld [vmem:[#allocation5 + $0x160] ss:$16 sps:$4 sm:$0xff]  }
  0xac   : > { %v302_v46 = vld [vmem:[%s5803_s11 + $0x8] sm:$0xff]  ;;  %v4763_v50 = vld [vmem:[#allocation5 + $0x184] ss:$16 sps:$4 sm:$0xff]   ;;  %v4767_v53 = vld [vmem:[#allocation5 + $0x180] ss:$16 sps:$4 sm:$0xff]   ;;  %s4596_s24 = smul.u32 152, %s5799_s16 }
  0xad   : > { %v4762_v48 = vld [vmem:[#allocation5 + $0x168] ss:$16 sps:$4 sm:$0xff]   ;;  %v4765_v52 = vld [vmem:[#allocation5 + $0x18c] ss:$16 sps:$4 sm:$0xff]   ;;  %v4769_v55 = vld [vmem:[#allocation5 + $0x1a4] ss:$16 sps:$4 sm:$0xff]  }
  0xae   : > { %2100 = vmatpush1.bf16.msra.mxu0 %v4719_v18  ;;  %2624 = vmatpush1.bf16.msra.mxu1 %v4720_v19  ;;  %v310_v49 = vld [vmem:[%s5803_s11 + $0x48] sm:$0xff]  ;;  %v4773_v57 = vld [vmem:[#allocation5 + $0x1a0] ss:$16 sps:$4 sm:$0xff]   ;;  %v4775_v59 = vld [vmem:[#allocation5 + $0x1c4] ss:$16 sps:$4 sm:$0xff]   ;;  %s6213_s26 = scalar_lea.vmem [#allocation11], %s4596_s24 }
  0xaf   : > { %2101 = vmatprep.subr.bf16.mxu0 %v4721_v20  ;;  %2625 = vmatprep.subr.bf16.mxu1 %v4723_v21  ;;  %v454_v51 = vpack.c.bf16 %v310_v49, %v302_v46  ;;  %v4768_v54 = vld [vmem:[#allocation5 + $0x188] ss:$16 sps:$4 sm:$0xff]   ;;  %v4771_v56 = vld [vmem:[#allocation5 + $0x1ac] ss:$16 sps:$4 sm:$0xff]   ;;  %v4779_v61 = vld [vmem:[#allocation5 + $0x1c0] ss:$16 sps:$4 sm:$0xff]  }
  0xb0   : > { %v4774_v58 = vld [vmem:[#allocation5 + $0x1a8] ss:$16 sps:$4 sm:$0xff]   ;;  %v4777_v60 = vld [vmem:[#allocation5 + $0x1cc] ss:$16 sps:$4 sm:$0xff]   ;;  %v4781_v63 = vld [vmem:[#allocation5 + $0x1e4] ss:$16 sps:$4 sm:$0xff]  }
  0xb1   : > { %2123 = vmatprep.mubr.bf16.mxu0 %v454_v51  ;;  %2647 = vmatprep.mubr.bf16.mxu1 %v454_v51  ;;  %v4780_v62 = vld [vmem:[#allocation5 + $0x1c8] ss:$16 sps:$4 sm:$0xff]   ;;  %v4783_v0 = vld [vmem:[#allocation5 + $0x1ec] ss:$16 sps:$4 sm:$0xff]   ;;  %v4785_v1 = vld [vmem:[#allocation5 + $0x1e0] ss:$16 sps:$4 sm:$0xff]  }
  0xb2   : > { %2102 = vmatpush1.bf16.msra.mxu0 %v4725_v22  ;;  %2626 = vmatpush1.bf16.msra.mxu1 %v4726_v23  ;;  %v4786_v2 = vld [vmem:[#allocation5 + $0x1e8] ss:$16 sps:$4 sm:$0xff]   ;;  %v301_v3 = vld [vmem:[%s5803_s11] sm:$0xff]  ;;  %v4789_v5 = vld [vmem:[#allocation5 + $0x20c] ss:$16 sps:$4 sm:$0xff]   ;;  %s4184_s14 = smul.u32 2432, %s5601_s22 }
  0xb3   : > { %2103 = vmatprep.subr.bf16.mxu0 %v4727_v24  ;;  %2627 = vmatprep.subr.bf16.mxu1 %v4729_v25  ;;  %v309_v4 = vld [vmem:[%s5803_s11 + $0x40] sm:$0xff]  ;;  %v318_v6 = vld [vmem:[%s5803_s11 + $0x88] sm:$0xff]  ;;  %s3743_s9 = sshll.u32 %s6213_s26, 4  ;;  %s3730_s22 = scalar_lea.sflag [#allocation4], %s5799_s16  ;;  %s6257_s9 = int_to_ptr.vmem [resolvable:$true] %s3743_s9 }
  0xb4   : > { %v326_v7 = vld [vmem:[%s5803_s11 + $0xc8] sm:$0xff]  ;;  %v4798_v8 = vld [vmem:[#allocation5 + $0x204] ss:$16 sps:$4 sm:$0xff]   ;;  %v453_v9 = vpack.c.bf16 %v309_v4, %v301_v3  ;;  %v4796_v14 = vld [vmem:[#allocation5 + $0x200] ss:$16 sps:$4 sm:$0xff]   ;;  %s6255_s6 = scalar_lea.hbm %s6308_s5, %s4184_s14  ;;  %s5461_s30 = scalar_lea.vmem %s6257_s9, 2432 }
  0xb5   : > { %v4787_v10 = vld [vmem:[#allocation5 + $0x208] ss:$16 sps:$4 sm:$0xff]   ;;  %v462_v11 = vpack.c.bf16 %v326_v7, %v318_v6  ;;  %v4792_v12 = vld [vmem:[#allocation5 + $0x22c] ss:$16 sps:$4 sm:$0xff]   ;;  %v317_v15 = vld [vmem:[%s5803_s11 + $0x80] sm:$0xff]  ;;  %p5462_p4 = scmp.ne.s32.totalorder %s6257_s9, %s5461_s30  ;;  %s5547_s8 = smov [#allocation11]  }
  0xb6   : > { %2104 = vmatpush1.bf16.msra.mxu0 %v4731_v26  ;;  %2628 = vmatpush1.bf16.msra.mxu1 %v4732_v27  ;;  %v4790_v13 = vld [vmem:[#allocation5 + $0x228] ss:$16 sps:$4 sm:$0xff]   ;;  %v4804_v16 = vld [vmem:[#allocation5 + $0x224] ss:$16 sps:$4 sm:$0xff]   ;;  %v4795_v18 = vld [vmem:[#allocation5 + $0x24c] ss:$16 sps:$4 sm:$0xff]  }
  0xb7   : > { %2105 = vmatprep.subr.bf16.mxu0 %v4733_v28  ;;  %2629 = vmatprep.subr.bf16.mxu1 %v4735_v29  ;;  %v325_v17 = vld [vmem:[%s5803_s11 + $0xc0] sm:$0xff]  ;;  %v334_v19 = vld [vmem:[%s5803_s11 + $0x108] sm:$0xff]  ;;  %p5463_p5 = pnand %p5462_p4, %p5749_p8  ;;  %s5465_s27 = sshll.u32 %s5547_s8, 4  ;;  %s5466_s27 = int_to_ptr.vmem [resolvable:$false] %s5465_s27 }
  0xb8   : > { %v342_v20 = vld [vmem:[%s5803_s11 + $0x148] sm:$0xff]  ;;  %v4802_v21 = vld [vmem:[#allocation5 + $0x220] ss:$16 sps:$4 sm:$0xff]   ;;  %v461_v22 = vpack.c.bf16 %v325_v17, %v317_v15  ;;  %v4810_v29 = vld [vmem:[#allocation5 + $0x244] ss:$16 sps:$4 sm:$0xff]   ;;  %s5467_s29 = scalar_lea.vmem %s5466_s27, 4864  ;;  %p5468_p12 = scmp.lt.s32.totalorder %s6257_s9, %s5466_s27 }
  0xb9   : > { %v4793_v23 = vld [vmem:[#allocation5 + $0x248] ss:$16 sps:$4 sm:$0xff]   ;;  %v470_v24 = vpack.c.bf16 %v342_v20, %v334_v19  ;;  %v4801_v25 = vld [vmem:[#allocation5 + $0x26c] ss:$16 sps:$4 sm:$0xff]   ;;  %v333_v27 = vld [vmem:[%s5803_s11 + $0x100] sm:$0xff]  ;;  %p5464_p7 = pneg %p5463_p5  ;;  %p5469_p2 = scmp.lt.s32.totalorder %s5467_s29, %s5461_s30 }
  0xba   : > { %2106 = vmatpush1.bf16.msra.mxu0 %v4737_v30  ;;  %2630 = vmatpush1.bf16.msra.mxu1 %v4738_v31  ;;  %v4799_v26 = vld [vmem:[#allocation5 + $0x268] ss:$16 sps:$4 sm:$0xff]   ;;  %v341_v28 = vld [vmem:[%s5803_s11 + $0x140] sm:$0xff]  ;;  %v4807_v30 = vld [vmem:[#allocation5 + $0x28c] ss:$16 sps:$4 sm:$0xff]  }
  0xbb   : > { %2107 = vmatprep.subr.bf16.mxu0 %v4739_v32  ;;  %2631 = vmatprep.subr.bf16.mxu1 %v4741_v33  ;;  %v350_v31 = vld [vmem:[%s5803_s11 + $0x188] sm:$0xff]  ;;  %v4808_v32 = vld [vmem:[#allocation5 + $0x240] ss:$16 sps:$4 sm:$0xff]   ;;  %v4816_v33 = vld [vmem:[#allocation5 + $0x264] ss:$16 sps:$4 sm:$0xff]   ;;  %p5470_p1 = por %p5469_p2, %p5468_p12 }
  0xbc   : > { %v374_v46 = vld [vmem:[%s5803_s11 + $0x248] sm:$0xff]  ;;  %v4828_v51 = vld [vmem:[#allocation5 + $0x2a4] ss:$16 sps:$4 sm:$0xff]   ;;  %v4835_v3 = vld [vmem:[#allocation5 + $0x2e0] ss:$16 sps:$4 sm:$0xff]  }
  0xbd   : > { %v4817_v49 = vld [vmem:[#allocation5 + $0x2c8] ss:$16 sps:$4 sm:$0xff]   ;;  %v4840_v4 = vld [vmem:[#allocation5 + $0x32c] ss:$16 sps:$4 sm:$0xff]   ;;  %v389_v6 = vld [vmem:[%s5803_s11 + $0x2c0] sm:$0xff]  ;;  %p5471_p13 = pnand %p5470_p1, %p5464_p7 }
  0xbe   : > { %2108 = vmatpush1.bf16.msra.mxu0 %v4743_v34  ;;  %2632 = vmatpush1.bf16.msra.mxu1 %v4744_v35  ;;  %v358_v34 = vld [vmem:[%s5803_s11 + $0x1c8] sm:$0xff]  ;;  %v469_v35 = vpack.c.bf16 %v341_v28, %v333_v27  ;;  %v4849_v15 = vld [vmem:[#allocation5 + $0x324] ss:$16 sps:$4 sm:$0xff]   ;;  %v4847_v17 = vld [vmem:[#allocation5 + $0x320] ss:$16 sps:$4 sm:$0xff]  }
  0xbf   : > { %2109 = vmatprep.subr.bf16.mxu0 %v4745_v36  ;;  %2633 = vmatprep.subr.bf16.mxu1 %v4747_v37  ;;  %v4805_v36 = vld [vmem:[#allocation5 + $0x288] ss:$16 sps:$4 sm:$0xff]   ;;  %v478_v37 = vpack.c.bf16 %v358_v34, %v350_v31  ;;  %v405_v19 = vld [vmem:[%s5803_s11 + $0x340] sm:$0xff] }
  0xc0   : > { %v4838_v7 = vld [vmem:[#allocation5 + $0x328] ss:$16 sps:$4 sm:$0xff]   ;;  %v4855_v20 = vld [vmem:[#allocation5 + $0x344] ss:$16 sps:$4 sm:$0xff]   ;;  %v4856_v28 = vld [vmem:[#allocation5 + $0x360] ss:$16 sps:$4 sm:$0xff]  }
  0xc1   : > { %v413_v31 = vld [vmem:[%s5803_s11 + $0x380] sm:$0xff] }
  0xc2   : > { %2110 = vmatpush1.bf16.msra.mxu0 %v4749_v38  ;;  %2634 = vmatpush1.bf16.msra.mxu1 %v4750_v39  ;;  %v4813_v38 = vld [vmem:[#allocation5 + $0x2ac] ss:$16 sps:$4 sm:$0xff]   ;;  %v349_v39 = vld [vmem:[%s5803_s11 + $0x180] sm:$0xff] }
  0xc3   : > { %2111 = vmatprep.subr.bf16.mxu0 %v4751_v40  ;;  %2635 = vmatprep.subr.bf16.mxu1 %v4753_v41  ;;  %v357_v40 = vld [vmem:[%s5803_s11 + $0x1c0] sm:$0xff]  ;;  %v4811_v41 = vld [vmem:[#allocation5 + $0x2a8] ss:$16 sps:$4 sm:$0xff]  }
  0xc4   : > { %v421_v34 = vld [vmem:[%s5803_s11 + $0x3c0] sm:$0xff] }
  0xc6   : > { %2112 = vmatpush1.bf16.msra.mxu0 %v4755_v42  ;;  %2636 = vmatpush1.bf16.msra.mxu1 %v4756_v43  ;;  %v4814_v42 = vld [vmem:[#allocation5 + $0x260] ss:$16 sps:$4 sm:$0xff]   ;;  %v4819_v43 = vld [vmem:[#allocation5 + $0x2cc] ss:$16 sps:$4 sm:$0xff]  }
  0xc7   : > { %2113 = vmatprep.subr.bf16.mxu0 %v4757_v44  ;;  %2637 = vmatprep.subr.bf16.mxu1 %v4759_v45  ;;  %v4822_v44 = vld [vmem:[#allocation5 + $0x284] ss:$16 sps:$4 sm:$0xff]   ;;  %v366_v45 = vld [vmem:[%s5803_s11 + $0x208] sm:$0xff] }
  0xca   : > { %2114 = vmatpush1.bf16.msra.mxu0 %v4761_v47  ;;  %2638 = vmatpush1.bf16.msra.mxu1 %v4762_v48  ;;  %v4820_v47 = vld [vmem:[#allocation5 + $0x280] ss:$16 sps:$4 sm:$0xff]   ;;  %v477_v48 = vpack.c.bf16 %v357_v40, %v349_v39  ;;  %v4873_v39 = vld [vmem:[#allocation5 + $0x3cc] ss:$16 sps:$4 sm:$0xff]   ;;  %v509_v40 = vpack.c.bf16 %v421_v34, %v413_v31 }
  0xcb   : > { %2115 = vmatprep.subr.bf16.mxu0 %v4763_v50  ;;  %2639 = vmatprep.subr.bf16.mxu1 %v4765_v52  ;;  %v486_v50 = vpack.c.bf16 %v374_v46, %v366_v45  ;;  %v365_v52 = vld [vmem:[%s5803_s11 + $0x200] sm:$0xff]  ;;  %v4879_v45 = vld [vmem:[#allocation5 + $0x3ec] ss:$16 sps:$4 sm:$0xff]   ;;  %v359_v34 = vld [vmem:[%s5803_s11 + $0x1d0] sm:$0xff] }
  0xcc   : > { %v429_v46 = vld [vmem:[%s5803_s11 + $0x400] sm:$0xff] }
  0xce   : > { %2116 = vmatpush1.bf16.msra.mxu0 %v4767_v53  ;;  %2640 = vmatpush1.bf16.msra.mxu1 %v4768_v54  ;;  %v4825_v53 = vld [vmem:[#allocation5 + $0x2ec] ss:$16 sps:$4 sm:$0xff]   ;;  %v4826_v54 = vld [vmem:[#allocation5 + $0x2a0] ss:$16 sps:$4 sm:$0xff]  }
  0xcf   : > { %2117 = vmatprep.subr.bf16.mxu0 %v4769_v55  ;;  %2641 = vmatprep.subr.bf16.mxu1 %v4771_v56  ;;  %v373_v55 = vld [vmem:[%s5803_s11 + $0x240] sm:$0xff] }
  0xd0   : > { %v4831_v56 = vld [vmem:[#allocation5 + $0x2c4] ss:$16 sps:$4 sm:$0xff]  }
  0xd2   : > { %2118 = vmatpush1.bf16.msra.mxu0 %v4773_v57  ;;  %2642 = vmatpush1.bf16.msra.mxu1 %v4774_v58  ;;  %v4823_v57 = vld [vmem:[#allocation5 + $0x2e8] ss:$16 sps:$4 sm:$0xff]  }
  0xd3   : > { %2119 = vmatprep.subr.bf16.mxu0 %v4775_v59  ;;  %2643 = vmatprep.subr.bf16.mxu1 %v4777_v60  ;;  %v382_v58 = vld [vmem:[%s5803_s11 + $0x288] sm:$0xff]  ;;  %v4829_v60 = vld [vmem:[#allocation5 + $0x2c0] ss:$16 sps:$4 sm:$0xff]  }
  0xd4   : > { %v390_v59 = vld [vmem:[%s5803_s11 + $0x2c8] sm:$0xff] }
  0xd6   : > { %2120 = vmatpush1.bf16.msra.mxu0 %v4779_v61  ;;  %2644 = vmatpush1.bf16.msra.mxu1 %v4780_v62  ;;  %v4834_v61 = vld [vmem:[#allocation5 + $0x30c] ss:$16 sps:$4 sm:$0xff]   ;;  %v485_v62 = vpack.c.bf16 %v373_v55, %v365_v52  ;;  %v4882_v55 = vld [vmem:[#allocation5 + $0x3e4] ss:$16 sps:$4 sm:$0xff]  }
  0xd7   : > { %2121 = vmatprep.subr.bf16.mxu0 %v4781_v63  ;;  %2645 = vmatprep.subr.bf16.mxu1 %v4783_v0  ;;  %v494_v63 = vpack.c.bf16 %v390_v59, %v382_v58  ;;  %v4832_v0 = vld [vmem:[#allocation5 + $0x308] ss:$16 sps:$4 sm:$0xff]   ;;  %v4885_v52 = vld [vmem:[#allocation5 + $0x40c] ss:$16 sps:$4 sm:$0xff]   ;;  %v445_v58 = vld [vmem:[%s5803_s11 + $0x480] sm:$0xff] }
  0xd8   : > { %v304_v59 = vld [vmem:[%s5803_s11 + $0x18] sm:$0xff] }
  0xda   : > { %2122 = vmatpush1.bf16.msra.mxu0 %v4785_v1  ;;  %2646 = vmatpush1.bf16.msra.mxu1 %v4786_v2  ;;  %v4837_v1 = vld [vmem:[#allocation5 + $0x2e4] ss:$16 sps:$4 sm:$0xff]  }
  0xdb   : > { %2746 = vmatprep.subr.bf16.mxu1 %v4789_v5  ;;  %2222 = vmatprep.subr.bf16.mxu0 %v4798_v8  ;;  %v381_v2 = vld [vmem:[%s5803_s11 + $0x280] sm:$0xff]  ;;  %v398_v8 = vld [vmem:[%s5803_s11 + $0x308] sm:$0xff] }
  0xdc   : > { %v4843_v5 = vld [vmem:[#allocation5 + $0x304] ss:$16 sps:$4 sm:$0xff]  }
  0xdd   : > { %2124 = vmatmul.mubr.bf16.vlgmr.msra.gmra.mrb[0].mxu0 %v453_v9  ;;  %2648 = vmatmul.mubr.bf16.vlgmr.msra.gmra.mrb[0].mxu1 %v453_v9  ;;  %v406_v9 = vld [vmem:[%s5803_s11 + $0x348] sm:$0xff] }
  0xde   : > { %2747 = vmatpush1.bf16.msra.mxu1 %v4787_v10  ;;  %2133 = vmatprep.mubr.bf16.mxu0 %v462_v11  ;;  %v4841_v10 = vld [vmem:[#allocation5 + $0x300] ss:$16 sps:$4 sm:$0xff]  }
  0xdf   : > { %2748 = vmatprep.subr.bf16.mxu1 %v4792_v12  ;;  %2657 = vmatprep.mubr.bf16.mxu1 %v462_v11  ;;  %v4846_v11 = vld [vmem:[#allocation5 + $0x34c] ss:$16 sps:$4 sm:$0xff]   ;;  %v493_v12 = vpack.c.bf16 %v389_v6, %v381_v2 }
  0xe0   : > { %2223 = vmatpush1.bf16.msra.mxu0 %v4796_v14  ;;  %v4844_v14 = vld [vmem:[#allocation5 + $0x348] ss:$16 sps:$4 sm:$0xff]   ;;  %v4888_v6 = vld [vmem:[#allocation5 + $0x42c] ss:$16 sps:$4 sm:$0xff]  }
  0xe1   : > { %2224 = vmatprep.subr.bf16.mxu0 %v4804_v16  ;;  %v397_v16 = vld [vmem:[%s5803_s11 + $0x300] sm:$0xff]  ;;  %v328_v2 = vld [vmem:[%s5803_s11 + $0xd8] sm:$0xff] }
  0xe2   : > { %2749 = vmatpush1.bf16.msra.mxu1 %v4790_v13  ;;  %v502_v13 = vpack.c.bf16 %v406_v9, %v398_v8  ;;  %v319_v8 = vld [vmem:[%s5803_s11 + $0x90] sm:$0xff] }
  0xe3   : > { %2750 = vmatprep.subr.bf16.mxu1 %v4795_v18  ;;  %v4852_v18 = vld [vmem:[#allocation5 + $0x36c] ss:$16 sps:$4 sm:$0xff]   ;;  %v4892_v9 = vld [vmem:[#allocation5 + $0x400] ss:$16 sps:$4 sm:$0xff]  }
  0xe4   : > { %2225 = vmatpush1.bf16.msra.mxu0 %v4802_v21  ;;  %v414_v21 = vld [vmem:[%s5803_s11 + $0x388] sm:$0xff] }
  0xe5   : > { %2134 = vmatmul.mubr.bf16.gmra.mrb[4].mxu0 %v461_v22  ;;  %2658 = vmatmul.mubr.bf16.gmra.mrb[4].mxu1 %v461_v22  ;;  %v422_v22 = vld [vmem:[%s5803_s11 + $0x3c8] sm:$0xff] }
  0xe6   : > { %2751 = vmatpush1.bf16.msra.mxu1 %v4793_v23  ;;  %2143 = vmatprep.mubr.bf16.mxu0 %v470_v24  ;;  %v4850_v23 = vld [vmem:[#allocation5 + $0x368] ss:$16 sps:$4 sm:$0xff]   ;;  %v510_v27 = vpack.c.bf16 %v422_v22, %v414_v21  ;;  %v335_v21 = vld [vmem:[%s5803_s11 + $0x110] sm:$0xff] }
  0xe7   : > { %2667 = vmatprep.mubr.bf16.mxu1 %v470_v24  ;;  %2752 = vmatprep.subr.bf16.mxu1 %v4801_v25  ;;  %v4853_v24 = vld [vmem:[#allocation5 + $0x340] ss:$16 sps:$4 sm:$0xff]   ;;  %v4861_v25 = vld [vmem:[#allocation5 + $0x38c] ss:$16 sps:$4 sm:$0xff]   ;;  %v4906_v22 = vld [vmem:[#allocation5 + $0x444] ss:$16 sps:$4 sm:$0xff]  }
  0xe8   : > { %2226 = vmatprep.subr.bf16.mxu0 %v4810_v29  ;;  %v4858_v29 = vld [vmem:[#allocation5 + $0x364] ss:$16 sps:$4 sm:$0xff]  }
  0xe9   : > { %2227 = vmatpush1.bf16.msra.mxu0 %v4808_v32  ;;  %v4867_v32 = vld [vmem:[#allocation5 + $0x3ac] ss:$16 sps:$4 sm:$0xff]  }
  0xea   : > { %2753 = vmatpush1.bf16.msra.mxu1 %v4799_v26  ;;  %2228 = vmatprep.subr.bf16.mxu0 %v4816_v33  ;;  %v501_v26 = vpack.c.bf16 %v405_v19, %v397_v16  ;;  %v4864_v33 = vld [vmem:[#allocation5 + $0x384] ss:$16 sps:$4 sm:$0xff]   ;;  %v4897_v19 = vld [vmem:[#allocation5 + $0x46c] ss:$16 sps:$4 sm:$0xff]  }
  0xeb   : > { %2754 = vmatprep.subr.bf16.mxu1 %v4807_v30  ;;  %v4859_v30 = vld [vmem:[#allocation5 + $0x388] ss:$16 sps:$4 sm:$0xff]  }
  0xed   : > { %2144 = vmatmul.mubr.bf16.gmra.mrb[8].mxu0 %v469_v35  ;;  %2668 = vmatmul.mubr.bf16.gmra.mrb[8].mxu1 %v469_v35  ;;  %v430_v35 = vld [vmem:[%s5803_s11 + $0x408] sm:$0xff] }
  0xee   : > { %2755 = vmatpush1.bf16.msra.mxu1 %v4805_v36  ;;  %2153 = vmatprep.mubr.bf16.mxu0 %v478_v37  ;;  %v438_v36 = vld [vmem:[%s5803_s11 + $0x448] sm:$0xff] }
  0xef   : > { %2677 = vmatprep.mubr.bf16.mxu1 %v478_v37  ;;  %2756 = vmatprep.subr.bf16.mxu1 %v4813_v38  ;;  %v4865_v37 = vld [vmem:[#allocation5 + $0x3a8] ss:$16 sps:$4 sm:$0xff]   ;;  %v4862_v38 = vld [vmem:[#allocation5 + $0x380] ss:$16 sps:$4 sm:$0xff]  }
  0xf0   : > { %2229 = vmatpush1.bf16.msra.mxu0 %v4814_v42  ;;  %v4868_v42 = vld [vmem:[#allocation5 + $0x3a0] ss:$16 sps:$4 sm:$0xff]  }
  0xf1   : > { %2230 = vmatprep.subr.bf16.mxu0 %v4822_v44  ;;  %v4871_v44 = vld [vmem:[#allocation5 + $0x3c8] ss:$16 sps:$4 sm:$0xff]  }
  0xf2   : > { %2757 = vmatpush1.bf16.msra.mxu1 %v4811_v41  ;;  %v518_v41 = vpack.c.bf16 %v438_v36, %v430_v35  ;;  %v4910_v35 = vld [vmem:[#allocation5 + $0x460] ss:$16 sps:$4 sm:$0xff]   ;;  %v4907_v36 = vld [vmem:[#allocation5 + $0x4a8] ss:$16 sps:$4 sm:$0xff]  }
  0xf3   : > { %2758 = vmatprep.subr.bf16.mxu1 %v4819_v43  ;;  %v4870_v43 = vld [vmem:[#allocation5 + $0x3a4] ss:$16 sps:$4 sm:$0xff]  }
  0xf4   : > { %2231 = vmatpush1.bf16.msra.mxu0 %v4820_v47  ;;  %v4876_v47 = vld [vmem:[#allocation5 + $0x3c4] ss:$16 sps:$4 sm:$0xff]  }
  0xf5   : > { %2154 = vmatmul.mubr.bf16.gmra.mrb[12].mxu0 %v477_v48  ;;  %2678 = vmatmul.mubr.bf16.gmra.mrb[12].mxu1 %v477_v48  ;;  %v437_v48 = vld [vmem:[%s5803_s11 + $0x440] sm:$0xff] }
  0xf6   : > { %2163 = vmatprep.mubr.bf16.mxu0 %v486_v50  ;;  %2687 = vmatprep.mubr.bf16.mxu1 %v486_v50  ;;  %v4874_v50 = vld [vmem:[#allocation5 + $0x3c0] ss:$16 sps:$4 sm:$0xff]  }
  0xf7   : > { %2759 = vmatpush1.bf16.msra.mxu1 %v4817_v49  ;;  %2232 = vmatprep.subr.bf16.mxu0 %v4828_v51  ;;  %v446_v49 = vld [vmem:[%s5803_s11 + $0x488] sm:$0xff] }
  0xf8   : > { %2760 = vmatprep.subr.bf16.mxu1 %v4825_v53  ;;  %2233 = vmatpush1.bf16.msra.mxu0 %v4826_v54  ;;  %v4877_v51 = vld [vmem:[#allocation5 + $0x3e8] ss:$16 sps:$4 sm:$0xff]   ;;  %v517_v53 = vpack.c.bf16 %v437_v48, %v429_v46  ;;  %v526_v54 = vpack.c.bf16 %v446_v49, %v446_v49  ;;  %v4921_v46 = vld [vmem:[#allocation5 + $0x4ec] ss:$16 sps:$4 sm:$0xff]   ;;  %v367_v48 = vld [vmem:[%s5803_s11 + $0x210] sm:$0xff] }
  0xf9   : > { %2234 = vmatprep.subr.bf16.mxu0 %v4831_v56  ;;  %v4880_v56 = vld [vmem:[#allocation5 + $0x3e0] ss:$16 sps:$4 sm:$0xff]   ;;  %v4927_v49 = vld [vmem:[#allocation5 + $0x4c4] ss:$16 sps:$4 sm:$0xff]  }
  0xfb   : > { %2761 = vmatpush1.bf16.msra.mxu1 %v4823_v57  ;;  %v4894_v57 = vld [vmem:[#allocation5 + $0x404] ss:$16 sps:$4 sm:$0xff]  }
  0xfc   : > { %2762 = vmatprep.subr.bf16.mxu1 %v4834_v61  ;;  %2235 = vmatpush1.bf16.msra.mxu0 %v4829_v60  ;;  %v312_v60 = vld [vmem:[%s5803_s11 + $0x58] sm:$0xff]  ;;  %v525_v61 = vpack.c.bf16 %v445_v58, %v445_v58 }
  0xfd   : > { %2164 = vmatmul.mubr.bf16.gmra.mrb[16].mxu0 %v485_v62  ;;  %2688 = vmatmul.mubr.bf16.gmra.mrb[16].mxu1 %v485_v62  ;;  %v456_v62 = vpack.c.bf16 %v312_v60, %v304_v59  ;;  %v4928_v58 = vld [vmem:[#allocation5 + $0x508] ss:$16 sps:$4 sm:$0xff]   ;;  %v4933_v59 = vld [vmem:[#allocation5 + $0x4e4] ss:$16 sps:$4 sm:$0xff]  }
  0xfe   : > { %2173 = vmatprep.mubr.bf16.mxu0 %v494_v63  ;;  %2697 = vmatprep.mubr.bf16.mxu1 %v494_v63  ;;  %v303_v63 = vld [vmem:[%s5803_s11 + $0x10] sm:$0xff] }
  0xff   : > { %2763 = vmatpush1.bf16.msra.mxu1 %v4832_v0  ;;  %2236 = vmatprep.subr.bf16.mxu0 %v4837_v1  ;;  %v311_v0 = vld [vmem:[%s5803_s11 + $0x50] sm:$0xff]  ;;  %v320_v1 = vld [vmem:[%s5803_s11 + $0x98] sm:$0xff] }
 0x100   : > { %2237 = vmatpush1.bf16.msra.mxu0 %v4835_v3  ;;  %2764 = vmatprep.subr.bf16.mxu1 %v4840_v4  ;;  %v455_v3 = vpack.c.bf16 %v311_v0, %v303_v63  ;;  %v4883_v4 = vld [vmem:[#allocation5 + $0x408] ss:$16 sps:$4 sm:$0xff]   ;;  %v383_v60 = vld [vmem:[%s5803_s11 + $0x290] sm:$0xff] }
 0x101   : > { %2238 = vmatprep.subr.bf16.mxu0 %v4843_v5  ;;  %v464_v5 = vpack.c.bf16 %v328_v2, %v320_v1  ;;  %v391_v63 = vld [vmem:[%s5803_s11 + $0x2d0] sm:$0xff]  ;;  %v4934_v0 = vld [vmem:[#allocation5 + $0x528] ss:$16 sps:$4 sm:$0xff]  }
 0x102   : > { %v4939_v1 = vld [vmem:[#allocation5 + $0x504] ss:$16 sps:$4 sm:$0xff]   ;;  %v400_v2 = vld [vmem:[%s5803_s11 + $0x318] sm:$0xff] }
 0x103   : > { %2765 = vmatpush1.bf16.msra.mxu1 %v4838_v7  ;;  %v4886_v7 = vld [vmem:[#allocation5 + $0x428] ss:$16 sps:$4 sm:$0xff]  }
 0x104   : > { %2239 = vmatpush1.bf16.msra.mxu0 %v4841_v10  ;;  %2766 = vmatprep.subr.bf16.mxu1 %v4846_v11  ;;  %v4900_v10 = vld [vmem:[#allocation5 + $0x424] ss:$16 sps:$4 sm:$0xff]  }
 0x105   : > { %2174 = vmatmul.mubr.bf16.gmra.mrb[20].mxu0 %v493_v12  ;;  %2698 = vmatmul.mubr.bf16.gmra.mrb[20].mxu1 %v493_v12  ;;  %v327_v11 = vld [vmem:[%s5803_s11 + $0xd0] sm:$0xff]  ;;  %v4891_v12 = vld [vmem:[#allocation5 + $0x44c] ss:$16 sps:$4 sm:$0xff]  }
 0x106   : > { %2183 = vmatprep.mubr.bf16.mxu0 %v502_v13  ;;  %2707 = vmatprep.mubr.bf16.mxu1 %v502_v13  ;;  %v336_v13 = vld [vmem:[%s5803_s11 + $0x118] sm:$0xff]  ;;  %v463_v16 = vpack.c.bf16 %v327_v11, %v319_v8  ;;  %v407_v11 = vld [vmem:[%s5803_s11 + $0x350] sm:$0xff] }
 0x107   : > { %2767 = vmatpush1.bf16.msra.mxu1 %v4844_v14  ;;  %2240 = vmatprep.subr.bf16.mxu0 %v4849_v15  ;;  %v344_v14 = vld [vmem:[%s5803_s11 + $0x158] sm:$0xff]  ;;  %v4898_v15 = vld [vmem:[#allocation5 + $0x420] ss:$16 sps:$4 sm:$0xff]  }
 0x108   : > { %2241 = vmatpush1.bf16.msra.mxu0 %v4847_v17  ;;  %2768 = vmatprep.subr.bf16.mxu1 %v4852_v18  ;;  %v4889_v17 = vld [vmem:[#allocation5 + $0x448] ss:$16 sps:$4 sm:$0xff]   ;;  %v472_v18 = vpack.c.bf16 %v344_v14, %v336_v13  ;;  %v4948_v13 = vld [vmem:[#allocation5 + $0x56c] ss:$16 sps:$4 sm:$0xff]  }
 0x109   : > { %2242 = vmatprep.subr.bf16.mxu0 %v4855_v20  ;;  %v4895_v20 = vld [vmem:[#allocation5 + $0x468] ss:$16 sps:$4 sm:$0xff]  }
 0x10a   : > { %v4940_v8 = vld [vmem:[#allocation5 + $0x548] ss:$16 sps:$4 sm:$0xff]  }
 0x10b   : > { %2769 = vmatpush1.bf16.msra.mxu1 %v4850_v23  ;;  %v343_v23 = vld [vmem:[%s5803_s11 + $0x150] sm:$0xff]  ;;  %v416_v14 = vld [vmem:[%s5803_s11 + $0x398] sm:$0xff] }
 0x10c   : > { %2243 = vmatpush1.bf16.msra.mxu0 %v4853_v24  ;;  %2770 = vmatprep.subr.bf16.mxu1 %v4861_v25  ;;  %v4904_v24 = vld [vmem:[#allocation5 + $0x440] ss:$16 sps:$4 sm:$0xff]   ;;  %v4912_v25 = vld [vmem:[#allocation5 + $0x464] ss:$16 sps:$4 sm:$0xff]  }
 0x10d   : > { %2184 = vmatmul.mubr.bf16.gmra.mrb[24].mxu0 %v501_v26  ;;  %2708 = vmatmul.mubr.bf16.gmra.mrb[24].mxu1 %v501_v26  ;;  %v4903_v26 = vld [vmem:[#allocation5 + $0x48c] ss:$16 sps:$4 sm:$0xff]  }
 0x10e   : > { %2193 = vmatprep.mubr.bf16.mxu0 %v510_v27  ;;  %2717 = vmatprep.mubr.bf16.mxu1 %v510_v27  ;;  %v352_v27 = vld [vmem:[%s5803_s11 + $0x198] sm:$0xff] }
 0x10f   : > { %2244 = vmatprep.subr.bf16.mxu0 %v4858_v29  ;;  %2771 = vmatpush1.bf16.msra.mxu1 %v4859_v30  ;;  %v471_v29 = vpack.c.bf16 %v343_v23, %v335_v21  ;;  %v4901_v30 = vld [vmem:[#allocation5 + $0x488] ss:$16 sps:$4 sm:$0xff]  }
 0x110   : > { %2245 = vmatpush1.bf16.msra.mxu0 %v4856_v28  ;;  %2772 = vmatprep.subr.bf16.mxu1 %v4867_v32  ;;  %v360_v28 = vld [vmem:[%s5803_s11 + $0x1d8] sm:$0xff] }
 0x111   : > { %2246 = vmatprep.subr.bf16.mxu0 %v4864_v33  ;;  %v480_v31 = vpack.c.bf16 %v360_v28, %v352_v27  ;;  %v4909_v32 = vld [vmem:[#allocation5 + $0x4ac] ss:$16 sps:$4 sm:$0xff]   ;;  %v351_v33 = vld [vmem:[%s5803_s11 + $0x190] sm:$0xff]  ;;  %v4955_v23 = vld [vmem:[#allocation5 + $0x588] ss:$16 sps:$4 sm:$0xff]  }
 0x112   : > { %v4960_v27 = vld [vmem:[#allocation5 + $0x584] ss:$16 sps:$4 sm:$0xff]  }
 0x113   : > { %2773 = vmatpush1.bf16.msra.mxu1 %v4865_v37  ;;  %v4915_v37 = vld [vmem:[#allocation5 + $0x4cc] ss:$16 sps:$4 sm:$0xff]   ;;  %v423_v28 = vld [vmem:[%s5803_s11 + $0x3d0] sm:$0xff] }
 0x114   : > { %2247 = vmatpush1.bf16.msra.mxu0 %v4862_v38  ;;  %2774 = vmatprep.subr.bf16.mxu1 %v4873_v39  ;;  %v4918_v38 = vld [vmem:[#allocation5 + $0x484] ss:$16 sps:$4 sm:$0xff]   ;;  %v368_v39 = vld [vmem:[%s5803_s11 + $0x218] sm:$0xff] }
 0x115   : > { %2194 = vmatmul.mubr.bf16.gmra.mrb[28].mxu0 %v509_v40  ;;  %2718 = vmatmul.mubr.bf16.gmra.mrb[28].mxu1 %v509_v40  ;;  %v376_v40 = vld [vmem:[%s5803_s11 + $0x258] sm:$0xff] }
 0x116   : > { %2203 = vmatprep.mubr.bf16.mxu0 %v518_v41  ;;  %2727 = vmatprep.mubr.bf16.mxu1 %v518_v41  ;;  %v4916_v41 = vld [vmem:[#allocation5 + $0x480] ss:$16 sps:$4 sm:$0xff]  }
 0x117   : > { %2248 = vmatprep.subr.bf16.mxu0 %v4870_v43  ;;  %2775 = vmatpush1.bf16.msra.mxu1 %v4871_v44  ;;  %v4913_v43 = vld [vmem:[#allocation5 + $0x4c8] ss:$16 sps:$4 sm:$0xff]   ;;  %v488_v44 = vpack.c.bf16 %v376_v40, %v368_v39  ;;  %v4975_v39 = vld [vmem:[#allocation5 + $0x5ec] ss:$16 sps:$4 sm:$0xff]   ;;  %v431_v40 = vld [vmem:[%s5803_s11 + $0x410] sm:$0xff] }
 0x118   : > { %2249 = vmatpush1.bf16.msra.mxu0 %v4868_v42  ;;  %2776 = vmatprep.subr.bf16.mxu1 %v4879_v45  ;;  %v479_v42 = vpack.c.bf16 %v359_v34, %v351_v33  ;;  %v4924_v45 = vld [vmem:[#allocation5 + $0x4a4] ss:$16 sps:$4 sm:$0xff]   ;;  %v4969_v33 = vld [vmem:[#allocation5 + $0x5cc] ss:$16 sps:$4 sm:$0xff]  }
 0x119   : > { %2250 = vmatprep.subr.bf16.mxu0 %v4876_v47  ;;  %v4922_v47 = vld [vmem:[#allocation5 + $0x4a0] ss:$16 sps:$4 sm:$0xff]  }
 0x11b   : > { %2777 = vmatpush1.bf16.msra.mxu1 %v4877_v51  ;;  %v4919_v51 = vld [vmem:[#allocation5 + $0x4e8] ss:$16 sps:$4 sm:$0xff]  }
 0x11c   : > { %2251 = vmatpush1.bf16.msra.mxu0 %v4874_v50  ;;  %2877 = vmatprep.subr.bf16.mxu1 %v4885_v52  ;;  %v375_v50 = vld [vmem:[%s5803_s11 + $0x250] sm:$0xff]  ;;  %v384_v52 = vld [vmem:[%s5803_s11 + $0x298] sm:$0xff] }
 0x11d   : > { %2204 = vmatmul.mubr.bf16.gmra.mrb[32].mxu0 %v517_v53  ;;  %2728 = vmatmul.mubr.bf16.gmra.mrb[32].mxu1 %v517_v53  ;;  %v392_v53 = vld [vmem:[%s5803_s11 + $0x2d8] sm:$0xff] }
 0x11e   : > { %2213 = vmatprep.mubr.bf16.mxu0 %v526_v54  ;;  %2737 = vmatprep.mubr.bf16.mxu1 %v526_v54  ;;  %v4925_v54 = vld [vmem:[#allocation5 + $0x4c0] ss:$16 sps:$4 sm:$0xff]  }
 0x11f   : > { %2252 = vmatprep.subr.bf16.mxu0 %v4882_v55  ;;  %v4930_v55 = vld [vmem:[#allocation5 + $0x50c] ss:$16 sps:$4 sm:$0xff]  }
 0x120   : > { %2253 = vmatpush1.bf16.msra.mxu0 %v4880_v56  ;;  %v487_v56 = vpack.c.bf16 %v375_v50, %v367_v48  ;;  %v4976_v50 = vld [vmem:[#allocation5 + $0x5e0] ss:$16 sps:$4 sm:$0xff]  }
 0x121   : > { %2353 = vmatprep.subr.bf16.mxu0 %v4894_v57  ;;  %v496_v57 = vpack.c.bf16 %v392_v53, %v384_v52  ;;  %v447_v52 = vld [vmem:[%s5803_s11 + $0x490] sm:$0xff]  ;;  %v306_v53 = vld [vmem:[%s5803_s11 + $0x28] sm:$0xff] }
 0x125   : > { %2214 = vmatmul.mubr.bf16.gmra.mrb[36].mxu0 %v525_v61  ;;  %2738 = vmatmul.mubr.bf16.gmra.mrb[36].mxu1 %v525_v61  ;;  %v4931_v61 = vld [vmem:[#allocation5 + $0x4e0] ss:$16 sps:$4 sm:$0xff]  }
 0x126   : > { %2254 = vmatprep.mubr.bf16.mxu0 %v456_v62  ;;  %2778 = vmatprep.mubr.bf16.mxu1 %v456_v62  ;;  %v4936_v62 = vld [vmem:[#allocation5 + $0x52c] ss:$16 sps:$4 sm:$0xff]  }
 0x12d   : > { %2255 = vmatmul.mubr.bf16.vlgmr.msra.gmra.mrb[0].mxu0 %v455_v3  ;;  %2779 = vmatmul.mubr.bf16.vlgmr.msra.gmra.mrb[0].mxu1 %v455_v3  ;;  %v408_v3 = vld [vmem:[%s5803_s11 + $0x358] sm:$0xff] }
 0x12e   : > { %2878 = vmatpush1.bf16.msra.mxu1 %v4883_v4  ;;  %2264 = vmatprep.mubr.bf16.mxu0 %v464_v5  ;;  %v4937_v4 = vld [vmem:[#allocation5 + $0x500] ss:$16 sps:$4 sm:$0xff]  }
 0x12f   : > { %2879 = vmatprep.subr.bf16.mxu1 %v4888_v6  ;;  %2788 = vmatprep.mubr.bf16.mxu1 %v464_v5  ;;  %v4942_v5 = vld [vmem:[#allocation5 + $0x54c] ss:$16 sps:$4 sm:$0xff]   ;;  %v495_v6 = vpack.c.bf16 %v391_v63, %v383_v60 }
 0x130   : > { %2354 = vmatpush1.bf16.msra.mxu0 %v4892_v9  ;;  %v4945_v9 = vld [vmem:[#allocation5 + $0x524] ss:$16 sps:$4 sm:$0xff]   ;;  %v330_v60 = vld [vmem:[%s5803_s11 + $0xe8] sm:$0xff] }
 0x131   : > { %2355 = vmatprep.subr.bf16.mxu0 %v4900_v10  ;;  %v399_v10 = vld [vmem:[%s5803_s11 + $0x310] sm:$0xff]  ;;  %v4984_v63 = vld [vmem:[#allocation5 + $0x62c] ss:$16 sps:$4 sm:$0xff]  }
 0x132   : > { %2880 = vmatpush1.bf16.msra.mxu1 %v4886_v7  ;;  %v504_v7 = vpack.c.bf16 %v408_v3, %v400_v2  ;;  %v4982_v2 = vld [vmem:[#allocation5 + $0x628] ss:$16 sps:$4 sm:$0xff]   ;;  %v321_v3 = vld [vmem:[%s5803_s11 + $0xa0] sm:$0xff] }
 0x133   : > { %2881 = vmatprep.subr.bf16.mxu1 %v4891_v12  ;;  %v4943_v12 = vld [vmem:[#allocation5 + $0x520] ss:$16 sps:$4 sm:$0xff]  }
 0x134   : > { %2356 = vmatpush1.bf16.msra.mxu0 %v4898_v15  ;;  %v4951_v15 = vld [vmem:[#allocation5 + $0x544] ss:$16 sps:$4 sm:$0xff]  }
 0x135   : > { %2265 = vmatmul.mubr.bf16.gmra.mrb[4].mxu0 %v463_v16  ;;  %2789 = vmatmul.mubr.bf16.gmra.mrb[4].mxu1 %v463_v16  ;;  %v424_v16 = vld [vmem:[%s5803_s11 + $0x3d8] sm:$0xff] }
 0x136   : > { %2882 = vmatpush1.bf16.msra.mxu1 %v4889_v17  ;;  %2274 = vmatprep.mubr.bf16.mxu0 %v472_v18  ;;  %v4946_v17 = vld [vmem:[#allocation5 + $0x568] ss:$16 sps:$4 sm:$0xff]   ;;  %v512_v21 = vpack.c.bf16 %v424_v16, %v416_v14  ;;  %v5002_v14 = vld [vmem:[#allocation5 + $0x644] ss:$16 sps:$4 sm:$0xff]   ;;  %v5000_v16 = vld [vmem:[#allocation5 + $0x640] ss:$16 sps:$4 sm:$0xff]  }
 0x137   : > { %2798 = vmatprep.mubr.bf16.mxu1 %v472_v18  ;;  %2883 = vmatprep.subr.bf16.mxu1 %v4897_v19  ;;  %v4949_v18 = vld [vmem:[#allocation5 + $0x540] ss:$16 sps:$4 sm:$0xff]   ;;  %v4957_v19 = vld [vmem:[#allocation5 + $0x58c] ss:$16 sps:$4 sm:$0xff]  }
 0x138   : > { %2357 = vmatprep.subr.bf16.mxu0 %v4906_v22  ;;  %v4954_v22 = vld [vmem:[#allocation5 + $0x564] ss:$16 sps:$4 sm:$0xff]  }
 0x139   : > { %2358 = vmatpush1.bf16.msra.mxu0 %v4904_v24  ;;  %v4952_v24 = vld [vmem:[#allocation5 + $0x560] ss:$16 sps:$4 sm:$0xff]  }
 0x13a   : > { %2884 = vmatpush1.bf16.msra.mxu1 %v4895_v20  ;;  %2359 = vmatprep.subr.bf16.mxu0 %v4912_v25  ;;  %v503_v20 = vpack.c.bf16 %v407_v11, %v399_v10  ;;  %v4963_v25 = vld [vmem:[#allocation5 + $0x5ac] ss:$16 sps:$4 sm:$0xff]   ;;  %v4985_v11 = vld [vmem:[#allocation5 + $0x648] ss:$16 sps:$4 sm:$0xff]  }
 0x13b   : > { %2885 = vmatprep.subr.bf16.mxu1 %v4903_v26  ;;  %v415_v26 = vld [vmem:[%s5803_s11 + $0x390] sm:$0xff] }
 0x13c   : > { %v511_v34 = vpack.c.bf16 %v423_v28, %v415_v26  ;;  %v5005_v26 = vld [vmem:[#allocation5 + $0x6ac] ss:$16 sps:$4 sm:$0xff]   ;;  %v5014_v28 = vld [vmem:[#allocation5 + $0x684] ss:$16 sps:$4 sm:$0xff]  }
 0x13d   : > { %2275 = vmatmul.mubr.bf16.gmra.mrb[8].mxu0 %v471_v29  ;;  %2799 = vmatmul.mubr.bf16.gmra.mrb[8].mxu1 %v471_v29  ;;  %v432_v29 = vld [vmem:[%s5803_s11 + $0x418] sm:$0xff] }
 0x13e   : > { %2886 = vmatpush1.bf16.msra.mxu1 %v4901_v30  ;;  %2284 = vmatprep.mubr.bf16.mxu0 %v480_v31  ;;  %v440_v30 = vld [vmem:[%s5803_s11 + $0x458] sm:$0xff] }
 0x13f   : > { %2808 = vmatprep.mubr.bf16.mxu1 %v480_v31  ;;  %2887 = vmatprep.subr.bf16.mxu1 %v4909_v32  ;;  %v4961_v31 = vld [vmem:[#allocation5 + $0x5a8] ss:$16 sps:$4 sm:$0xff]   ;;  %v4958_v32 = vld [vmem:[#allocation5 + $0x580] ss:$16 sps:$4 sm:$0xff]  }
 0x140   : > { %2360 = vmatpush1.bf16.msra.mxu0 %v4910_v35  ;;  %v520_v35 = vpack.c.bf16 %v440_v30, %v432_v29  ;;  %v353_v29 = vld [vmem:[%s5803_s11 + $0x1a0] sm:$0xff] }
 0x141   : > { %2361 = vmatprep.subr.bf16.mxu0 %v4918_v38  ;;  %v4964_v38 = vld [vmem:[#allocation5 + $0x5a0] ss:$16 sps:$4 sm:$0xff]  }
 0x142   : > { %2888 = vmatpush1.bf16.msra.mxu1 %v4907_v36  ;;  %v4966_v36 = vld [vmem:[#allocation5 + $0x5a4] ss:$16 sps:$4 sm:$0xff]  }
 0x143   : > { %2889 = vmatprep.subr.bf16.mxu1 %v4915_v37  ;;  %v4967_v37 = vld [vmem:[#allocation5 + $0x5c8] ss:$16 sps:$4 sm:$0xff]   ;;  %v361_v30 = vld [vmem:[%s5803_s11 + $0x1e0] sm:$0xff] }
 0x144   : > { %2362 = vmatpush1.bf16.msra.mxu0 %v4916_v41  ;;  %v4972_v41 = vld [vmem:[#allocation5 + $0x5c4] ss:$16 sps:$4 sm:$0xff]  }
 0x145   : > { %2285 = vmatmul.mubr.bf16.gmra.mrb[12].mxu0 %v479_v42  ;;  %2809 = vmatmul.mubr.bf16.gmra.mrb[12].mxu1 %v479_v42  ;;  %v439_v42 = vld [vmem:[%s5803_s11 + $0x450] sm:$0xff] }
 0x146   : > { %2294 = vmatprep.mubr.bf16.mxu0 %v488_v44  ;;  %2818 = vmatprep.mubr.bf16.mxu1 %v488_v44  ;;  %v4970_v44 = vld [vmem:[#allocation5 + $0x5c0] ss:$16 sps:$4 sm:$0xff]  }
 0x147   : > { %2890 = vmatpush1.bf16.msra.mxu1 %v4913_v43  ;;  %2363 = vmatprep.subr.bf16.mxu0 %v4924_v45  ;;  %v448_v43 = vld [vmem:[%s5803_s11 + $0x498] sm:$0xff] }
 0x148   : > { %2891 = vmatprep.subr.bf16.mxu1 %v4921_v46  ;;  %2364 = vmatpush1.bf16.msra.mxu0 %v4922_v47  ;;  %v4973_v45 = vld [vmem:[#allocation5 + $0x5e8] ss:$16 sps:$4 sm:$0xff]   ;;  %v4981_v46 = vld [vmem:[#allocation5 + $0x60c] ss:$16 sps:$4 sm:$0xff]   ;;  %v519_v47 = vpack.c.bf16 %v439_v42, %v431_v40  ;;  %v528_v48 = vpack.c.bf16 %v448_v43, %v448_v43  ;;  %v5023_v42 = vld [vmem:[#allocation5 + $0x6c4] ss:$16 sps:$4 sm:$0xff]  }
 0x149   : > { %2365 = vmatprep.subr.bf16.mxu0 %v4927_v49  ;;  %v4978_v49 = vld [vmem:[#allocation5 + $0x5e4] ss:$16 sps:$4 sm:$0xff]   ;;  %v5017_v40 = vld [vmem:[#allocation5 + $0x6ec] ss:$16 sps:$4 sm:$0xff]  }
 0x14a   : > { %v369_v43 = vld [vmem:[%s5803_s11 + $0x220] sm:$0xff] }
 0x14b   : > { %2892 = vmatpush1.bf16.msra.mxu1 %v4919_v51  ;;  %v4990_v51 = vld [vmem:[#allocation5 + $0x604] ss:$16 sps:$4 sm:$0xff]  }
 0x14c   : > { %2893 = vmatprep.subr.bf16.mxu1 %v4930_v55  ;;  %2366 = vmatpush1.bf16.msra.mxu0 %v4925_v54  ;;  %v314_v54 = vld [vmem:[%s5803_s11 + $0x68] sm:$0xff]  ;;  %v527_v55 = vpack.c.bf16 %v447_v52, %v447_v52 }
 0x14d   : > { %2295 = vmatmul.mubr.bf16.gmra.mrb[16].mxu0 %v487_v56  ;;  %2819 = vmatmul.mubr.bf16.gmra.mrb[16].mxu1 %v487_v56  ;;  %v458_v56 = vpack.c.bf16 %v314_v54, %v306_v53  ;;  %v5024_v52 = vld [vmem:[#allocation5 + $0x708] ss:$16 sps:$4 sm:$0xff]   ;;  %v5029_v53 = vld [vmem:[#allocation5 + $0x6e4] ss:$16 sps:$4 sm:$0xff]   ;;  %v5027_v54 = vld [vmem:[#allocation5 + $0x6e0] ss:$16 sps:$4 sm:$0xff]  }
 0x14e   : > { %2304 = vmatprep.mubr.bf16.mxu0 %v496_v57  ;;  %2828 = vmatprep.mubr.bf16.mxu1 %v496_v57  ;;  %v305_v57 = vld [vmem:[%s5803_s11 + $0x20] sm:$0xff] }
 0x14f   : > { %2894 = vmatpush1.bf16.msra.mxu1 %v4928_v58  ;;  %2367 = vmatprep.subr.bf16.mxu0 %v4933_v59  ;;  %v313_v58 = vld [vmem:[%s5803_s11 + $0x60] sm:$0xff]  ;;  %v322_v59 = vld [vmem:[%s5803_s11 + $0xa8] sm:$0xff] }
 0x150   : > { %2368 = vmatpush1.bf16.msra.mxu0 %v4931_v61  ;;  %2895 = vmatprep.subr.bf16.mxu1 %v4936_v62  ;;  %v4979_v61 = vld [vmem:[#allocation5 + $0x608] ss:$16 sps:$4 sm:$0xff]   ;;  %v457_v62 = vpack.c.bf16 %v313_v58, %v305_v57  ;;  %v385_v57 = vld [vmem:[%s5803_s11 + $0x2a0] sm:$0xff] }
 0x151   : > { %2369 = vmatprep.subr.bf16.mxu0 %v4939_v1  ;;  %v4988_v1 = vld [vmem:[#allocation5 + $0x600] ss:$16 sps:$4 sm:$0xff]  }
 0x152   : > { %v393_v58 = vld [vmem:[%s5803_s11 + $0x2e0] sm:$0xff] }
 0x153   : > { %2896 = vmatpush1.bf16.msra.mxu1 %v4934_v0  ;;  %v466_v0 = vpack.c.bf16 %v330_v60, %v322_v59  ;;  %v5030_v59 = vld [vmem:[#allocation5 + $0x728] ss:$16 sps:$4 sm:$0xff]  }
 0x154   : > { %2370 = vmatpush1.bf16.msra.mxu0 %v4937_v4  ;;  %2897 = vmatprep.subr.bf16.mxu1 %v4942_v5  ;;  %v329_v4 = vld [vmem:[%s5803_s11 + $0xe0] sm:$0xff]  ;;  %v4987_v5 = vld [vmem:[#allocation5 + $0x64c] ss:$16 sps:$4 sm:$0xff]  }
 0x155   : > { %2305 = vmatmul.mubr.bf16.gmra.mrb[20].mxu0 %v495_v6  ;;  %2829 = vmatmul.mubr.bf16.gmra.mrb[20].mxu1 %v495_v6  ;;  %v4996_v6 = vld [vmem:[#allocation5 + $0x624] ss:$16 sps:$4 sm:$0xff]   ;;  %v465_v10 = vpack.c.bf16 %v329_v4, %v321_v3  ;;  %v402_v60 = vld [vmem:[%s5803_s11 + $0x328] sm:$0xff]  ;;  %v5039_v4 = vld [vmem:[#allocation5 + $0x720] ss:$16 sps:$4 sm:$0xff]  }
 0x156   : > { %2314 = vmatprep.mubr.bf16.mxu0 %v504_v7  ;;  %2838 = vmatprep.mubr.bf16.mxu1 %v504_v7  ;;  %v338_v7 = vld [vmem:[%s5803_s11 + $0x128] sm:$0xff]  ;;  %v5041_v3 = vld [vmem:[#allocation5 + $0x724] ss:$16 sps:$4 sm:$0xff]  }
 0x157   : > { %2898 = vmatpush1.bf16.msra.mxu1 %v4940_v8  ;;  %2371 = vmatprep.subr.bf16.mxu0 %v4945_v9  ;;  %v346_v8 = vld [vmem:[%s5803_s11 + $0x168] sm:$0xff]  ;;  %v4994_v9 = vld [vmem:[#allocation5 + $0x620] ss:$16 sps:$4 sm:$0xff]  }
 0x158   : > { %2372 = vmatpush1.bf16.msra.mxu0 %v4943_v12  ;;  %2899 = vmatprep.subr.bf16.mxu1 %v4948_v13  ;;  %v474_v12 = vpack.c.bf16 %v346_v8, %v338_v7  ;;  %v4993_v13 = vld [vmem:[#allocation5 + $0x66c] ss:$16 sps:$4 sm:$0xff]   ;;  %v401_v7 = vld [vmem:[%s5803_s11 + $0x320] sm:$0xff] }
 0x159   : > { %2373 = vmatprep.subr.bf16.mxu0 %v4951_v15  ;;  %v4991_v15 = vld [vmem:[#allocation5 + $0x668] ss:$16 sps:$4 sm:$0xff]   ;;  %v409_v8 = vld [vmem:[%s5803_s11 + $0x360] sm:$0xff] }
 0x15b   : > { %2900 = vmatpush1.bf16.msra.mxu1 %v4946_v17  ;;  %v337_v17 = vld [vmem:[%s5803_s11 + $0x120] sm:$0xff] }
 0x15c   : > { %2374 = vmatpush1.bf16.msra.mxu0 %v4949_v18  ;;  %2901 = vmatprep.subr.bf16.mxu1 %v4957_v19  ;;  %v345_v18 = vld [vmem:[%s5803_s11 + $0x160] sm:$0xff] }
 0x15d   : > { %2315 = vmatmul.mubr.bf16.gmra.mrb[24].mxu0 %v503_v20  ;;  %2839 = vmatmul.mubr.bf16.gmra.mrb[24].mxu1 %v503_v20  ;;  %v5008_v19 = vld [vmem:[#allocation5 + $0x664] ss:$16 sps:$4 sm:$0xff]   ;;  %v4999_v20 = vld [vmem:[#allocation5 + $0x68c] ss:$16 sps:$4 sm:$0xff]  }
 0x15e   : > { %2324 = vmatprep.mubr.bf16.mxu0 %v512_v21  ;;  %2848 = vmatprep.mubr.bf16.mxu1 %v512_v21  ;;  %v354_v21 = vld [vmem:[%s5803_s11 + $0x1a8] sm:$0xff] }
 0x15f   : > { %2375 = vmatprep.subr.bf16.mxu0 %v4954_v22  ;;  %2902 = vmatpush1.bf16.msra.mxu1 %v4955_v23  ;;  %v362_v22 = vld [vmem:[%s5803_s11 + $0x1e8] sm:$0xff]  ;;  %v473_v23 = vpack.c.bf16 %v345_v18, %v337_v17  ;;  %v5048_v18 = vld [vmem:[#allocation5 + $0x760] ss:$16 sps:$4 sm:$0xff]  }
 0x160   : > { %2376 = vmatpush1.bf16.msra.mxu0 %v4952_v24  ;;  %2903 = vmatprep.subr.bf16.mxu1 %v4963_v25  ;;  %v4997_v24 = vld [vmem:[#allocation5 + $0x688] ss:$16 sps:$4 sm:$0xff]   ;;  %v482_v25 = vpack.c.bf16 %v362_v22, %v354_v21  ;;  %v417_v21 = vld [vmem:[%s5803_s11 + $0x3a0] sm:$0xff] }
 0x161   : > { %2377 = vmatprep.subr.bf16.mxu0 %v4960_v27  ;;  %v5006_v27 = vld [vmem:[#allocation5 + $0x660] ss:$16 sps:$4 sm:$0xff]   ;;  %v5051_v17 = vld [vmem:[#allocation5 + $0x788] ss:$16 sps:$4 sm:$0xff]  }
 0x162   : > { %v425_v22 = vld [vmem:[%s5803_s11 + $0x3e0] sm:$0xff] }
 0x163   : > { %2904 = vmatpush1.bf16.msra.mxu1 %v4961_v31  ;;  %v5003_v31 = vld [vmem:[#allocation5 + $0x6a8] ss:$16 sps:$4 sm:$0xff]  }
 0x164   : > { %2378 = vmatpush1.bf16.msra.mxu0 %v4958_v32  ;;  %2905 = vmatprep.subr.bf16.mxu1 %v4969_v33  ;;  %v5011_v32 = vld [vmem:[#allocation5 + $0x6cc] ss:$16 sps:$4 sm:$0xff]  }
 0x165   : > { %2325 = vmatmul.mubr.bf16.gmra.mrb[28].mxu0 %v511_v34  ;;  %2849 = vmatmul.mubr.bf16.gmra.mrb[28].mxu1 %v511_v34  ;;  %v370_v33 = vld [vmem:[%s5803_s11 + $0x228] sm:$0xff] }
 0x166   : > { %2334 = vmatprep.mubr.bf16.mxu0 %v520_v35  ;;  %2858 = vmatprep.mubr.bf16.mxu1 %v520_v35  ;;  %v378_v34 = vld [vmem:[%s5803_s11 + $0x268] sm:$0xff]  ;;  %v5012_v35 = vld [vmem:[#allocation5 + $0x680] ss:$16 sps:$4 sm:$0xff]  }
 0x167   : > { %2379 = vmatprep.subr.bf16.mxu0 %v4966_v36  ;;  %2906 = vmatpush1.bf16.msra.mxu1 %v4967_v37  ;;  %v481_v36 = vpack.c.bf16 %v361_v30, %v353_v29  ;;  %v490_v37 = vpack.c.bf16 %v378_v34, %v370_v33  ;;  %v5062_v30 = vld [vmem:[#allocation5 + $0x7a4] ss:$16 sps:$4 sm:$0xff]   ;;  %v5071_v33 = vld [vmem:[#allocation5 + $0x7ec] ss:$16 sps:$4 sm:$0xff]  }
 0x168   : > { %2380 = vmatpush1.bf16.msra.mxu0 %v4964_v38  ;;  %2907 = vmatprep.subr.bf16.mxu1 %v4975_v39  ;;  %v5009_v38 = vld [vmem:[#allocation5 + $0x6c8] ss:$16 sps:$4 sm:$0xff]   ;;  %v5020_v39 = vld [vmem:[#allocation5 + $0x6a4] ss:$16 sps:$4 sm:$0xff]  }
 0x169   : > { %2381 = vmatprep.subr.bf16.mxu0 %v4972_v41  ;;  %v5018_v41 = vld [vmem:[#allocation5 + $0x6a0] ss:$16 sps:$4 sm:$0xff]   ;;  %v5068_v34 = vld [vmem:[#allocation5 + $0x7c4] ss:$16 sps:$4 sm:$0xff]  }
 0x16b   : > { %2908 = vmatpush1.bf16.msra.mxu1 %v4973_v45  ;;  %v5015_v45 = vld [vmem:[#allocation5 + $0x6e8] ss:$16 sps:$4 sm:$0xff]  }
 0x16c   : > { %2382 = vmatpush1.bf16.msra.mxu0 %v4970_v44  ;;  %3008 = vmatprep.subr.bf16.mxu1 %v4981_v46  ;;  %v377_v44 = vld [vmem:[%s5803_s11 + $0x260] sm:$0xff]  ;;  %v386_v46 = vld [vmem:[%s5803_s11 + $0x2a8] sm:$0xff] }
 0x16d   : > { %2335 = vmatmul.mubr.bf16.gmra.mrb[32].mxu0 %v519_v47  ;;  %2859 = vmatmul.mubr.bf16.gmra.mrb[32].mxu1 %v519_v47  ;;  %v394_v47 = vld [vmem:[%s5803_s11 + $0x2e8] sm:$0xff] }
 0x16e   : > { %2344 = vmatprep.mubr.bf16.mxu0 %v528_v48  ;;  %2868 = vmatprep.mubr.bf16.mxu1 %v528_v48  ;;  %v5021_v48 = vld [vmem:[#allocation5 + $0x6c0] ss:$16 sps:$4 sm:$0xff]  }
 0x16f   : > { %2383 = vmatprep.subr.bf16.mxu0 %v4978_v49  ;;  %v5026_v49 = vld [vmem:[#allocation5 + $0x70c] ss:$16 sps:$4 sm:$0xff]  }
 0x170   : > { %2384 = vmatpush1.bf16.msra.mxu0 %v4976_v50  ;;  %v489_v50 = vpack.c.bf16 %v377_v44, %v369_v43  ;;  %v5074_v43 = vld [vmem:[#allocation5 + $0x7e4] ss:$16 sps:$4 sm:$0xff]   ;;  %v5072_v44 = vld [vmem:[#allocation5 + $0x7e0] ss:$16 sps:$4 sm:$0xff]  }
 0x171   : > { %2484 = vmatprep.subr.bf16.mxu0 %v4990_v51  ;;  %v498_v51 = vpack.c.bf16 %v394_v47, %v386_v46  ;;  %v308_v46 = vld [vmem:[%s5803_s11 + $0x38] sm:$0xff] }
 0x172   : > { %v316_v47 = vld [vmem:[%s5803_s11 + $0x78] sm:$0xff] }
 0x175   : > { %2345 = vmatmul.mubr.bf16.gmra.mrb[36].mxu0 %v527_v55  ;;  %2869 = vmatmul.mubr.bf16.gmra.mrb[36].mxu1 %v527_v55  ;;  %v5032_v55 = vld [vmem:[#allocation5 + $0x72c] ss:$16 sps:$4 sm:$0xff]  }
 0x176   : > { %2385 = vmatprep.mubr.bf16.mxu0 %v458_v56  ;;  %2909 = vmatprep.mubr.bf16.mxu1 %v458_v56  ;;  %v5035_v56 = vld [vmem:[#allocation5 + $0x704] ss:$16 sps:$4 sm:$0xff]  }
 0x17d   : > { %2386 = vmatmul.mubr.bf16.vlgmr.msra.gmra.mrb[0].mxu0 %v457_v62  ;;  %2910 = vmatmul.mubr.bf16.vlgmr.msra.gmra.mrb[0].mxu1 %v457_v62  ;;  %v5033_v62 = vld [vmem:[#allocation5 + $0x700] ss:$16 sps:$4 sm:$0xff]  }
 0x17e   : > { %3009 = vmatpush1.bf16.msra.mxu1 %v4979_v61  ;;  %2395 = vmatprep.mubr.bf16.mxu0 %v466_v0  ;;  %v410_v61 = vld [vmem:[%s5803_s11 + $0x368] sm:$0xff] }
 0x17f   : > { %3010 = vmatprep.subr.bf16.mxu1 %v4984_v63  ;;  %2919 = vmatprep.mubr.bf16.mxu1 %v466_v0  ;;  %v5038_v63 = vld [vmem:[#allocation5 + $0x74c] ss:$16 sps:$4 sm:$0xff]   ;;  %v497_v0 = vpack.c.bf16 %v393_v58, %v385_v57  ;;  %v323_v57 = vld [vmem:[%s5803_s11 + $0xb0] sm:$0xff] }
 0x180   : > { %2485 = vmatpush1.bf16.msra.mxu0 %v4988_v1  ;;  %v506_v1 = vpack.c.bf16 %v410_v61, %v402_v60  ;;  %v331_v58 = vld [vmem:[%s5803_s11 + $0xf0] sm:$0xff]  ;;  %v348_v60 = vld [vmem:[%s5803_s11 + $0x178] sm:$0xff] }
 0x181   : > { %2486 = vmatprep.subr.bf16.mxu0 %v4996_v6  ;;  %v5047_v6 = vld [vmem:[#allocation5 + $0x744] ss:$16 sps:$4 sm:$0xff]   ;;  %v467_v61 = vpack.c.bf16 %v331_v58, %v323_v57 }
 0x182   : > { %3011 = vmatpush1.bf16.msra.mxu1 %v4982_v2  ;;  %v5036_v2 = vld [vmem:[#allocation5 + $0x748] ss:$16 sps:$4 sm:$0xff]  }
 0x183   : > { %3012 = vmatprep.subr.bf16.mxu1 %v4987_v5  ;;  %v5044_v5 = vld [vmem:[#allocation5 + $0x76c] ss:$16 sps:$4 sm:$0xff]  }
 0x184   : > { %2487 = vmatpush1.bf16.msra.mxu0 %v4994_v9  ;;  %v418_v9 = vld [vmem:[%s5803_s11 + $0x3a8] sm:$0xff] }
 0x185   : > { %2396 = vmatmul.mubr.bf16.gmra.mrb[4].mxu0 %v465_v10  ;;  %2920 = vmatmul.mubr.bf16.gmra.mrb[4].mxu1 %v465_v10  ;;  %v426_v10 = vld [vmem:[%s5803_s11 + $0x3e8] sm:$0xff] }
 0x186   : > { %3013 = vmatpush1.bf16.msra.mxu1 %v4985_v11  ;;  %2405 = vmatprep.mubr.bf16.mxu0 %v474_v12  ;;  %v5042_v11 = vld [vmem:[#allocation5 + $0x768] ss:$16 sps:$4 sm:$0xff]  }
 0x187   : > { %2929 = vmatprep.mubr.bf16.mxu1 %v474_v12  ;;  %3014 = vmatprep.subr.bf16.mxu1 %v4993_v13  ;;  %v5045_v12 = vld [vmem:[#allocation5 + $0x740] ss:$16 sps:$4 sm:$0xff]   ;;  %v5053_v13 = vld [vmem:[#allocation5 + $0x78c] ss:$16 sps:$4 sm:$0xff]  }
 0x188   : > { %2488 = vmatprep.subr.bf16.mxu0 %v5002_v14  ;;  %v505_v14 = vpack.c.bf16 %v409_v8, %v401_v7  ;;  %v372_v7 = vld [vmem:[%s5803_s11 + $0x238] sm:$0xff] }
 0x189   : > { %2489 = vmatpush1.bf16.msra.mxu0 %v5000_v16  ;;  %v5050_v16 = vld [vmem:[#allocation5 + $0x764] ss:$16 sps:$4 sm:$0xff]   ;;  %v380_v8 = vld [vmem:[%s5803_s11 + $0x278] sm:$0xff] }
 0x18a   : > { %3015 = vmatpush1.bf16.msra.mxu1 %v4991_v15  ;;  %2490 = vmatprep.subr.bf16.mxu0 %v5008_v19  ;;  %v514_v15 = vpack.c.bf16 %v426_v10, %v418_v9  ;;  %v5059_v19 = vld [vmem:[#allocation5 + $0x7ac] ss:$16 sps:$4 sm:$0xff]   ;;  %v492_v10 = vpack.c.bf16 %v380_v8, %v372_v7 }
 0x18b   : > { %3016 = vmatprep.subr.bf16.mxu1 %v4999_v20  ;;  %v5056_v20 = vld [vmem:[#allocation5 + $0x784] ss:$16 sps:$4 sm:$0xff]  }
 0x18d   : > { %2406 = vmatmul.mubr.bf16.gmra.mrb[8].mxu0 %v473_v23  ;;  %2930 = vmatmul.mubr.bf16.gmra.mrb[8].mxu1 %v473_v23  ;;  %v434_v23 = vld [vmem:[%s5803_s11 + $0x428] sm:$0xff] }
 0x18e   : > { %3017 = vmatpush1.bf16.msra.mxu1 %v4997_v24  ;;  %2415 = vmatprep.mubr.bf16.mxu0 %v482_v25  ;;  %v442_v24 = vld [vmem:[%s5803_s11 + $0x468] sm:$0xff] }
 0x18f   : > { %2939 = vmatprep.mubr.bf16.mxu1 %v482_v25  ;;  %3018 = vmatprep.subr.bf16.mxu1 %v5005_v26  ;;  %v5057_v25 = vld [vmem:[#allocation5 + $0x7a8] ss:$16 sps:$4 sm:$0xff]   ;;  %v5054_v26 = vld [vmem:[#allocation5 + $0x780] ss:$16 sps:$4 sm:$0xff]   ;;  %v522_v29 = vpack.c.bf16 %v442_v24, %v434_v23 }
 0x190   : > { %2491 = vmatpush1.bf16.msra.mxu0 %v5006_v27  ;;  %v5065_v27 = vld [vmem:[#allocation5 + $0x7cc] ss:$16 sps:$4 sm:$0xff]   ;;  %v403_v23 = vld [vmem:[%s5803_s11 + $0x330] sm:$0xff] }
 0x191   : > { %2492 = vmatprep.subr.bf16.mxu0 %v5014_v28  ;;  %v513_v28 = vpack.c.bf16 %v425_v22, %v417_v21  ;;  %v411_v24 = vld [vmem:[%s5803_s11 + $0x370] sm:$0xff] }
 0x192   : > { %3019 = vmatpush1.bf16.msra.mxu1 %v5003_v31  ;;  %v5063_v31 = vld [vmem:[#allocation5 + $0x7c8] ss:$16 sps:$4 sm:$0xff]  }
 0x193   : > { %3020 = vmatprep.subr.bf16.mxu1 %v5011_v32  ;;  %v5060_v32 = vld [vmem:[#allocation5 + $0x7a0] ss:$16 sps:$4 sm:$0xff]  }
 0x194   : > { %2493 = vmatpush1.bf16.msra.mxu0 %v5012_v35  ;;  %v433_v35 = vld [vmem:[%s5803_s11 + $0x420] sm:$0xff] }
 0x195   : > { %2416 = vmatmul.mubr.bf16.gmra.mrb[12].mxu0 %v481_v36  ;;  %2940 = vmatmul.mubr.bf16.gmra.mrb[12].mxu1 %v481_v36  ;;  %v441_v36 = vld [vmem:[%s5803_s11 + $0x460] sm:$0xff] }
 0x196   : > { %2425 = vmatprep.mubr.bf16.mxu0 %v490_v37  ;;  %2949 = vmatprep.mubr.bf16.mxu1 %v490_v37  ;;  %v450_v37 = vld [vmem:[%s5803_s11 + $0x4a8] sm:$0xff] }
 0x197   : > { %3021 = vmatpush1.bf16.msra.mxu1 %v5009_v38  ;;  %2494 = vmatprep.subr.bf16.mxu0 %v5020_v39  ;;  %v5069_v38 = vld [vmem:[#allocation5 + $0x7e8] ss:$16 sps:$4 sm:$0xff]   ;;  %v5066_v39 = vld [vmem:[#allocation5 + $0x7c0] ss:$16 sps:$4 sm:$0xff]  }
 0x198   : > { %3022 = vmatprep.subr.bf16.mxu1 %v5017_v40  ;;  %2495 = vmatpush1.bf16.msra.mxu0 %v5018_v41  ;;  %v521_v40 = vpack.c.bf16 %v441_v36, %v433_v35  ;;  %v530_v41 = vpack.c.bf16 %v450_v37, %v450_v37  ;;  %v435_v35 = vld [vmem:[%s5803_s11 + $0x430] sm:$0xff]  ;;  %v452_v37 = vld [vmem:[%s5803_s11 + $0x4b8] sm:$0xff] }
 0x199   : > { %2496 = vmatprep.subr.bf16.mxu0 %v5023_v42  ;;  %v5075_v42 = vld [vmem:[#allocation8 + $0x40] sm:$0xff]   ;;  %v443_v36 = vld [vmem:[%s5803_s11 + $0x470] sm:$0xff] }
 0x19b   : > { %3023 = vmatpush1.bf16.msra.mxu1 %v5015_v45  ;;  %v449_v45 = vld [vmem:[%s5803_s11 + $0x4a0] sm:$0xff] }
 0x19c   : > { %3024 = vmatprep.subr.bf16.mxu1 %v5026_v49  ;;  %2497 = vmatpush1.bf16.msra.mxu0 %v5021_v48  ;;  %v529_v48 = vpack.c.bf16 %v449_v45, %v449_v45  ;;  %v460_v49 = vpack.c.bf16 %v316_v47, %v308_v46  ;;  %v5080_v45 = vld [vmem:[#allocation8 + $0x10] sm:$0xff]   ;;  %v5081_v46 = vld [vmem:[#allocation8 + $0x58] sm:$0xff]  }
 0x19d   : > { %2426 = vmatmul.mubr.bf16.gmra.mrb[16].mxu0 %v489_v50  ;;  %2950 = vmatmul.mubr.bf16.gmra.mrb[16].mxu1 %v489_v50  ;;  %v307_v50 = vld [vmem:[%s5803_s11 + $0x30] sm:$0xff]  ;;  %v5082_v47 = vld [vmem:[#allocation8 + $0x18] sm:$0xff]  }
 0x19e   : > { %2435 = vmatprep.mubr.bf16.mxu0 %v498_v51  ;;  %2959 = vmatprep.mubr.bf16.mxu1 %v498_v51  ;;  %v315_v51 = vld [vmem:[%s5803_s11 + $0x70] sm:$0xff] }
 0x19f   : > { %3025 = vmatpush1.bf16.msra.mxu1 %v5024_v52  ;;  %2498 = vmatprep.subr.bf16.mxu0 %v5029_v53  ;;  %v324_v52 = vld [vmem:[%s5803_s11 + $0xb8] sm:$0xff] }
 0x1a0   : > { %2499 = vmatpush1.bf16.msra.mxu0 %v5027_v54  ;;  %3026 = vmatprep.subr.bf16.mxu1 %v5032_v55  ;;  %v332_v53 = vld [vmem:[%s5803_s11 + $0xf8] sm:$0xff]  ;;  %v459_v54 = vpack.c.bf16 %v315_v51, %v307_v50  ;;  %v5085_v50 = vld [vmem:[#allocation8 + $0x68] sm:$0xff]  }
 0x1a1   : > { %2500 = vmatprep.subr.bf16.mxu0 %v5035_v56  ;;  %v468_v55 = vpack.c.bf16 %v332_v53, %v324_v52  ;;  %v5076_v56 = vld [vmem:[#allocation8] sm:$0xff]   ;;  %v5086_v51 = vld [vmem:[#allocation8 + $0x28] sm:$0xff]   ;;  %v5087_v52 = vld [vmem:[#allocation8 + $0x70] sm:$0xff]  }
 0x1a2   : > { %v5088_v53 = vld [vmem:[#allocation8 + $0x30] sm:$0xff]  }
 0x1a3   : > { %3027 = vmatpush1.bf16.msra.mxu1 %v5030_v59  ;;  %v340_v59 = vld [vmem:[%s5803_s11 + $0x138] sm:$0xff] }
 0x1a4   : > { %2501 = vmatpush1.bf16.msra.mxu0 %v5033_v62  ;;  %3028 = vmatprep.subr.bf16.mxu1 %v5038_v63  ;;  %v476_v62 = vpack.c.bf16 %v348_v60, %v340_v59  ;;  %v339_v63 = vld [vmem:[%s5803_s11 + $0x130] sm:$0xff]  ;;  %v789_v59 = vld [vmem:[#allocation7] sm:$0xf] }
 0x1a5   : > { %2436 = vmatmul.mubr.bf16.gmra.mrb[20].mxu0 %v497_v0  ;;  %2960 = vmatmul.mubr.bf16.gmra.mrb[20].mxu1 %v497_v0  ;;  %v347_v0 = vld [vmem:[%s5803_s11 + $0x170] sm:$0xff] }
 0x1a6   : > { %2445 = vmatprep.mubr.bf16.mxu0 %v506_v1  ;;  %2969 = vmatprep.mubr.bf16.mxu1 %v506_v1  ;;  %v356_v1 = vld [vmem:[%s5803_s11 + $0x1b8] sm:$0xff] }
 0x1a7   : > { %3029 = vmatpush1.bf16.msra.mxu1 %v5036_v2  ;;  %2502 = vmatprep.subr.bf16.mxu0 %v5041_v3  ;;  %v364_v2 = vld [vmem:[%s5803_s11 + $0x1f8] sm:$0xff]  ;;  %v475_v3 = vpack.c.bf16 %v347_v0, %v339_v63 }
 0x1a8   : > { %2503 = vmatpush1.bf16.msra.mxu0 %v5039_v4  ;;  %3030 = vmatprep.subr.bf16.mxu1 %v5044_v5  ;;  %v484_v4 = vpack.c.bf16 %v364_v2, %v356_v1  ;;  %v355_v5 = vld [vmem:[%s5803_s11 + $0x1b0] sm:$0xff] }
 0x1a9   : > { %2504 = vmatprep.subr.bf16.mxu0 %v5047_v6  ;;  %v363_v6 = vld [vmem:[%s5803_s11 + $0x1f0] sm:$0xff] }
 0x1aa   : > { %v483_v9 = vpack.c.bf16 %v363_v6, %v355_v5 }
 0x1ab   : > { %3031 = vmatpush1.bf16.msra.mxu1 %v5042_v11  ;;  %v371_v11 = vld [vmem:[%s5803_s11 + $0x230] sm:$0xff] }
 0x1ac   : > { %2505 = vmatpush1.bf16.msra.mxu0 %v5045_v12  ;;  %3032 = vmatprep.subr.bf16.mxu1 %v5053_v13  ;;  %v379_v12 = vld [vmem:[%s5803_s11 + $0x270] sm:$0xff]  ;;  %v388_v13 = vld [vmem:[%s5803_s11 + $0x2b8] sm:$0xff] }
 0x1ad   : > { %2446 = vmatmul.mubr.bf16.gmra.mrb[24].mxu0 %v505_v14  ;;  %2970 = vmatmul.mubr.bf16.gmra.mrb[24].mxu1 %v505_v14  ;;  %v396_v14 = vld [vmem:[%s5803_s11 + $0x2f8] sm:$0xff] }
 0x1ae   : > { %2455 = vmatprep.mubr.bf16.mxu0 %v514_v15  ;;  %2979 = vmatprep.mubr.bf16.mxu1 %v514_v15  ;;  %v491_v15 = vpack.c.bf16 %v379_v12, %v371_v11 }
 0x1af   : > { %2506 = vmatprep.subr.bf16.mxu0 %v5050_v16  ;;  %3033 = vmatpush1.bf16.msra.mxu1 %v5051_v17  ;;  %v500_v16 = vpack.c.bf16 %v396_v14, %v388_v13  ;;  %v387_v17 = vld [vmem:[%s5803_s11 + $0x2b0] sm:$0xff] }
 0x1b0   : > { %2507 = vmatpush1.bf16.msra.mxu0 %v5048_v18  ;;  %3034 = vmatprep.subr.bf16.mxu1 %v5059_v19  ;;  %v395_v18 = vld [vmem:[%s5803_s11 + $0x2f0] sm:$0xff]  ;;  %v404_v19 = vld [vmem:[%s5803_s11 + $0x338] sm:$0xff] }
 0x1b1   : > { %2508 = vmatprep.subr.bf16.mxu0 %v5056_v20  ;;  %v412_v20 = vld [vmem:[%s5803_s11 + $0x378] sm:$0xff]  ;;  %v499_v21 = vpack.c.bf16 %v395_v18, %v387_v17 }
 0x1b2   : > { %v508_v22 = vpack.c.bf16 %v412_v20, %v404_v19 }
 0x1b3   : > { %3035 = vmatpush1.bf16.msra.mxu1 %v5057_v25  ;;  %v420_v25 = vld [vmem:[%s5803_s11 + $0x3b8] sm:$0xff] }
 0x1b4   : > { %2509 = vmatpush1.bf16.msra.mxu0 %v5054_v26  ;;  %3036 = vmatprep.subr.bf16.mxu1 %v5065_v27  ;;  %v428_v26 = vld [vmem:[%s5803_s11 + $0x3f8] sm:$0xff]  ;;  %v507_v27 = vpack.c.bf16 %v411_v24, %v403_v23 }
 0x1b5   : > { %2456 = vmatmul.mubr.bf16.gmra.mrb[28].mxu0 %v513_v28  ;;  %2980 = vmatmul.mubr.bf16.gmra.mrb[28].mxu1 %v513_v28  ;;  %v516_v28 = vpack.c.bf16 %v428_v26, %v420_v25 }
 0x1b6   : > { %2465 = vmatprep.mubr.bf16.mxu0 %v522_v29  ;;  %2989 = vmatprep.mubr.bf16.mxu1 %v522_v29  ;;  %v419_v29 = vld [vmem:[%s5803_s11 + $0x3b0] sm:$0xff] }
 0x1b7   : > { %2510 = vmatprep.subr.bf16.mxu0 %v5062_v30  ;;  %3037 = vmatpush1.bf16.msra.mxu1 %v5063_v31  ;;  %v427_v30 = vld [vmem:[%s5803_s11 + $0x3f0] sm:$0xff]  ;;  %v436_v31 = vld [vmem:[%s5803_s11 + $0x438] sm:$0xff] }
 0x1b8   : > { %2511 = vmatpush1.bf16.msra.mxu0 %v5060_v32  ;;  %3038 = vmatprep.subr.bf16.mxu1 %v5071_v33  ;;  %v444_v32 = vld [vmem:[%s5803_s11 + $0x478] sm:$0xff]  ;;  %v515_v33 = vpack.c.bf16 %v427_v30, %v419_v29 }
 0x1b9   : > { %2512 = vmatprep.subr.bf16.mxu0 %v5068_v34  ;;  %v524_v34 = vpack.c.bf16 %v444_v32, %v436_v31 }
 0x1bb   : > { %3039 = vmatpush1.bf16.msra.mxu1 %v5069_v38  ;;  %v523_v38 = vpack.c.bf16 %v443_v36, %v435_v35 }
 0x1bc   : > { %2513 = vmatpush1.bf16.msra.mxu0 %v5066_v39  ;;  %4262 = vmatprep.subr.bf16.mxu1 %v5075_v42  ;;  %v532_v39 = vpack.c.bf16 %v452_v37, %v452_v37 }
 0x1bd   : > { %2466 = vmatmul.mubr.bf16.gmra.mrb[32].mxu0 %v521_v40  ;;  %2990 = vmatmul.mubr.bf16.gmra.mrb[32].mxu1 %v521_v40  ;;  %v451_v40 = vld [vmem:[%s5803_s11 + $0x4b0] sm:$0xff] }
 0x1be   : > { %2475 = vmatprep.mubr.bf16.mxu0 %v530_v41  ;;  %2999 = vmatprep.mubr.bf16.mxu1 %v530_v41  ;;  %v531_v41 = vpack.c.bf16 %v451_v40, %v451_v40 }
 0x1bf   : > { %2514 = vmatprep.subr.bf16.mxu0 %v5074_v43  ;;  %v5078_v43 = vld [vmem:[#allocation8 + $0x8] sm:$0xff]  }
 0x1c0   : > { %2515 = vmatpush1.bf16.msra.mxu0 %v5072_v44  ;;  %v5079_v44 = vld [vmem:[#allocation8 + $0x50] sm:$0xff]  }
 0x1c1   : > { %4186 = vmatprep.subr.bf16.mxu0 %v5075_v42  ;;  %v5077_v42 = vld [vmem:[#allocation8 + $0x48] sm:$0xff]  }
 0x1c5   : > { %2476 = vmatmul.mubr.bf16.gmra.mrb[36].mxu0 %v529_v48  ;;  %3000 = vmatmul.mubr.bf16.gmra.mrb[36].mxu1 %v529_v48  ;;  %v5083_v48 = vld [vmem:[#allocation8 + $0x60] sm:$0xff]  }
 0x1c6   : > { %2516 = vmatprep.mubr.bf16.mxu0 %v460_v49  ;;  %3040 = vmatprep.mubr.bf16.mxu1 %v460_v49  ;;  %v5084_v49 = vld [vmem:[#allocation8 + $0x20] sm:$0xff]  }
 0x1cd   : > { %2517 = vmatmul.mubr.bf16.vlgmr.msra.gmra.mrb[0].mxu0 %v459_v54  ;;  %3041 = vmatmul.mubr.bf16.vlgmr.msra.gmra.mrb[0].mxu1 %v459_v54  ;;  %v5089_v54 = vld [vmem:[#allocation8 + $0x78] sm:$0xff]  }
 0x1ce   : > { %2526 = vmatprep.mubr.bf16.mxu0 %v468_v55  ;;  %3050 = vmatprep.mubr.bf16.mxu1 %v468_v55  ;;  %v5090_v55 = vld [vmem:[#allocation8 + $0x38] sm:$0xff]  }
 0x1cf   : > { %4187 = vmatpush3.bf16.msra.mxu0 %v5076_v56  ;;  %4270 = vmatpush3.bf16.msra.mxu1 %v5076_v56  ;;  %v791_v56 = vlaneseq }
 0x1d0   : > { %4188 = vmatprep.subr.bf16.mxu0 %v5077_v42  ;;  %4263 = vmatprep.subr.bf16.mxu1 %v5077_v42 }
 0x1d1   : > { %v792_v57 = vshrl.u32 %v791_v56, 7 }
 0x1d3   : > { %4189 = vmatpush3.bf16.msra.mxu0 %v5078_v43  ;;  %4271 = vmatpush3.bf16.msra.mxu1 %v5078_v43  ;;  %v801_v58 = vsub.s32 2, %v792_v57  ;;  %v805_v60 = vsub.s32 3, %v792_v57  ;;  %v797_v0 = vsub.s32 1, %v792_v57 }
 0x1d4   : > { %4190 = vmatprep.subr.bf16.mxu0 %v5079_v44  ;;  %4264 = vmatprep.subr.bf16.mxu1 %v5079_v44 }
 0x1d5   : > { %2527 = vmatmul.mubr.bf16.gmra.mrb[4].mxu0 %v467_v61  ;;  %3051 = vmatmul.mubr.bf16.gmra.mrb[4].mxu1 %v467_v61  ;;  %v793_v61 = vsub.s32 0, %v792_v57  ;;  %v5971_v63 = vrot.slane %v789_v59, %v805_v60  ;;  %v5977_v11 = vrot.slane %v789_v59, %v797_v0 }
 0x1d6   : > { %2536 = vmatprep.mubr.bf16.mxu0 %v476_v62  ;;  %3060 = vmatprep.mubr.bf16.mxu1 %v476_v62  ;;  %v5969_v62 = vrot.slane %v789_v59, %v801_v58 }
 0x1d7   : > { %4191 = vmatpush3.bf16.msra.mxu0 %v5080_v45  ;;  %4272 = vmatpush3.bf16.msra.mxu1 %v5080_v45 }
 0x1d8   : > { %4192 = vmatprep.subr.bf16.mxu0 %v5081_v46  ;;  %4265 = vmatprep.subr.bf16.mxu1 %v5081_v46 }
 0x1db   : > { %4193 = vmatpush3.bf16.msra.mxu0 %v5082_v47  ;;  %4273 = vmatpush3.bf16.msra.mxu1 %v5082_v47 }
 0x1dc   : > { %4194 = vmatprep.subr.bf16.mxu0 %v5083_v48  ;;  %4266 = vmatprep.subr.bf16.mxu1 %v5083_v48 }
 0x1dd   : > { %2537 = vmatmul.mubr.bf16.gmra.mrb[8].mxu0 %v475_v3  ;;  %3061 = vmatmul.mubr.bf16.gmra.mrb[8].mxu1 %v475_v3  ;;  %v5973_v3 = vrot.slane %v789_v59, %v793_v61 }
 0x1de   : > { %2546 = vmatprep.mubr.bf16.mxu0 %v484_v4  ;;  %3070 = vmatprep.mubr.bf16.mxu1 %v484_v4 }
 0x1df   : > { %4195 = vmatpush3.bf16.msra.mxu0 %v5084_v49  ;;  %4274 = vmatpush3.bf16.msra.mxu1 %v5084_v49 }
 0x1e0   : > { %4196 = vmatprep.subr.bf16.mxu0 %v5085_v50  ;;  %4267 = vmatprep.subr.bf16.mxu1 %v5085_v50 }
 0x1e3   : > { %4197 = vmatpush3.bf16.msra.mxu0 %v5086_v51  ;;  %4275 = vmatpush3.bf16.msra.mxu1 %v5086_v51 }
 0x1e4   : > { %4198 = vmatprep.subr.bf16.mxu0 %v5087_v52  ;;  %4268 = vmatprep.subr.bf16.mxu1 %v5087_v52 }
 0x1e5   : > { %2547 = vmatmul.mubr.bf16.gmra.mrb[12].mxu0 %v483_v9  ;;  %3071 = vmatmul.mubr.bf16.gmra.mrb[12].mxu1 %v483_v9 }
 0x1e6   : > { %2556 = vmatprep.mubr.bf16.mxu0 %v492_v10  ;;  %3080 = vmatprep.mubr.bf16.mxu1 %v492_v10 }
 0x1e7   : > { %4199 = vmatpush3.bf16.msra.mxu0 %v5088_v53  ;;  %4276 = vmatpush3.bf16.msra.mxu1 %v5088_v53 }
 0x1e8   : > { %4200 = vmatprep.subr.bf16.mxu0 %v5089_v54  ;;  %4269 = vmatprep.subr.bf16.mxu1 %v5089_v54 }
 0x1eb   : > { %4201 = vmatpush3.bf16.msra.mxu0 %v5090_v55  ;;  %4277 = vmatpush3.bf16.msra.mxu1 %v5090_v55 }
 0x1ed   : > { %2557 = vmatmul.mubr.bf16.gmra.mrb[16].mxu0 %v491_v15  ;;  %3081 = vmatmul.mubr.bf16.gmra.mrb[16].mxu1 %v491_v15 }
 0x1ee   : > { %2566 = vmatprep.mubr.bf16.mxu0 %v500_v16  ;;  %3090 = vmatprep.mubr.bf16.mxu1 %v500_v16 }
 0x1f5   : > { %2567 = vmatmul.mubr.bf16.gmra.mrb[20].mxu0 %v499_v21  ;;  %3091 = vmatmul.mubr.bf16.gmra.mrb[20].mxu1 %v499_v21 }
 0x1f6   : > { %2576 = vmatprep.mubr.bf16.mxu0 %v508_v22  ;;  %3100 = vmatprep.mubr.bf16.mxu1 %v508_v22 }
 0x1fd   : > { %2577 = vmatmul.mubr.bf16.gmra.mrb[24].mxu0 %v507_v27  ;;  %3101 = vmatmul.mubr.bf16.gmra.mrb[24].mxu1 %v507_v27 }
 0x1fe   : > { %2586 = vmatprep.mubr.bf16.mxu0 %v516_v28  ;;  %3110 = vmatprep.mubr.bf16.mxu1 %v516_v28 }
 0x205   : > { %2587 = vmatmul.mubr.bf16.gmra.mrb[28].mxu0 %v515_v33  ;;  %3111 = vmatmul.mubr.bf16.gmra.mrb[28].mxu1 %v515_v33 }
 0x206   : > { %2596 = vmatprep.mubr.bf16.mxu0 %v524_v34  ;;  %3120 = vmatprep.mubr.bf16.mxu1 %v524_v34 }
 0x20d   : > { %2597 = vmatmul.mubr.bf16.gmra.mrb[32].mxu0 %v523_v38  ;;  %3121 = vmatmul.mubr.bf16.gmra.mrb[32].mxu1 %v523_v38 }
 0x20e   : > { %2606 = vmatprep.mubr.bf16.mxu0 %v532_v39  ;;  %3130 = vmatprep.mubr.bf16.mxu1 %v532_v39 }
 0x215   : > { %2607 = vmatmul.mubr.bf16.gmra.mrb[36].mxu0 %v531_v41  ;;  %3131 = vmatmul.mubr.bf16.gmra.mrb[36].mxu1 %v531_v41 }
 0x2a0   : > { %v2518_v1 = vpop.f32.mrb[0].mxu0  ;;  %v3042_v2 = vpop.f32.mrb[0].mxu1 }
 0x2a1   : > { %v4316_v4 = vadd.f32 %v3042_v2, %v5969_v62  ;;  %v2520_v5 = vpop.f32.mrb[1].mxu0  ;;  %v3044_v6 = vpop.f32.mrb[1].mxu1  ;;  %v4278_v17 = vadd.f32 %v2518_v1, %v5973_v3 }
 0x2a2   : > { %v4317_v7 = vadd.f32 %v3044_v6, %v5971_v63  ;;  %v2522_v8 = vpop.f32.mrb[2].mxu0  ;;  %v3046_v9 = vpop.f32.mrb[2].mxu1  ;;  %v4279_v20 = vadd.f32 %v2520_v5, %v5977_v11 }
 0x2a3   : > { %v4124_v10 = vmul.f32 -1.442695, %v4316_v4  ;;  %v4318_v12 = vadd.f32 %v3046_v9, %v5969_v62  ;;  %v2524_v13 = vpop.f32.mrb[3].mxu0  ;;  %v3048_v14 = vpop.f32.mrb[3].mxu1  ;;  %v4280_v21 = vadd.f32 %v2522_v8, %v5973_v3 }
 0x2a4   : > { %v4125_v15 = vmul.f32 -1.442695, %v4317_v7  ;;  %v4319_v16 = vadd.f32 %v3048_v14, %v5971_v63  ;;  %v4281_v30 = vadd.f32 %v2524_v13, %v5977_v11 }
 0x2a5   : > { %5091 = vpow2.f32 %v4124_v10  ;;  %v4126_v18 = vmul.f32 -1.442695, %v4318_v12 }
 0x2a6   : > { %5093 = vpow2.f32 %v4125_v15  ;;  %v4127_v19 = vmul.f32 -1.442695, %v4319_v16 }
 0x2a7   : > { %5095 = vpow2.f32 %v4126_v18 }
 0x2a8   : > { %v2528_v22 = vpop.f32.mrb[4].mxu0  ;;  %v3052_v23 = vpop.f32.mrb[4].mxu1  ;;  %5097 = vtanh.f32 %v4278_v17 }
 0x2a9   : > { %v4320_v24 = vadd.f32 %v3052_v23, %v5969_v62  ;;  %v2530_v25 = vpop.f32.mrb[5].mxu0  ;;  %v3054_v26 = vpop.f32.mrb[5].mxu1  ;;  %5099 = vpow2.f32 %v4127_v19  ;;  %v4282_v37 = vadd.f32 %v2528_v22, %v5973_v3 }
 0x2aa   : > { %v4321_v27 = vadd.f32 %v3054_v26, %v5971_v63  ;;  %v2532_v28 = vpop.f32.mrb[6].mxu0  ;;  %v3056_v29 = vpop.f32.mrb[6].mxu1  ;;  %5101 = vtanh.f32 %v4279_v20  ;;  %v4283_v50 = vadd.f32 %v2530_v25, %v5977_v11 }
 0x2ab   : > { %v4128_v31 = vmul.f32 -1.442695, %v4320_v24  ;;  %v4322_v32 = vadd.f32 %v3056_v29, %v5969_v62  ;;  %v5988_v33 = vpop.f32.mrb[7].mxu0  ;;  %v3058_v34 = vpop.f32.mrb[7].mxu1  ;;  %5103 = vtanh.f32 %v4280_v21  ;;  %v4284_v0 = vadd.f32 %v2532_v28, %v5973_v3 }
 0x2ac   : > { %v4129_v35 = vmul.f32 -1.442695, %v4321_v27  ;;  %v4323_v36 = vadd.f32 %v3058_v34, %v5971_v63  ;;  %v4285_v25 = vadd.f32 %v5988_v33, %v5977_v11 }
 0x2ad   : > { %5105 = vpow2.f32 %v4128_v31  ;;  %v4130_v38 = vmul.f32 -1.442695, %v4322_v32 }
 0x2ae   : > { %5107 = vpow2.f32 %v4129_v35  ;;  %v4131_v42 = vmul.f32 -1.442695, %v4323_v36 }
 0x2af   : > { %v5092_v39 = vpop.eup %5091  ;;  %5109 = vtanh.f32 %v4281_v30 }
 0x2b0   : > { %v5094_v40 = vpop.eup %5093  ;;  %v3291_v41 = vadd.f32 1.0, %v5092_v39  ;;  %5111 = vpow2.f32 %v4130_v38  ;;  %v5992_v43 = vpop.f32.mrb[8].mxu0 }
 0x2b1   : > { %v3062_v44 = vpop.f32.mrb[8].mxu1  ;;  %v3292_v45 = vadd.f32 1.0, %v5094_v40  ;;  %5113 = vtanh.f32 %v4282_v37  ;;  %v5995_v47 = vpop.f32.mrb[9].mxu0  ;;  %v4286_v35 = vadd.f32 %v5992_v43, %v5973_v3 }
 0x2b2   : > { %v4324_v46 = vadd.f32 %v3062_v44, %v5969_v62  ;;  %v3064_v48 = vpop.f32.mrb[9].mxu1  ;;  %v5096_v49 = vpop.eup %5095  ;;  %5115 = vrcp.f32 %v3291_v41 }
 0x2b3   : > { %v5998_v51 = vpop.f32.mrb[10].mxu0  ;;  %v3066_v52 = vpop.f32.mrb[10].mxu1  ;;  %5117 = vrcp.f32 %v3292_v45  ;;  %v3293_v54 = vadd.f32 1.0, %v5096_v49  ;;  %v4325_v59 = vadd.f32 %v3064_v48, %v5971_v63 }
 0x2b4   : > { %v5098_v53 = vpop.eup %5097  ;;  %v6000_v55 = vpop.f32.mrb[11].mxu0  ;;  %5119 = vpow2.f32 %v4131_v42  ;;  %v4132_v58 = vmul.f32 -1.442695, %v4324_v46  ;;  %v4326_v4 = vadd.f32 %v3066_v52, %v5969_v62  ;;  %v4287_v46 = vadd.f32 %v5995_v47, %v5977_v11 }
 0x2b5   : > { %v3068_v56 = vpop.f32.mrb[11].mxu1  ;;  %v5100_v57 = vpop.eup %5099  ;;  %5121 = vrcp.f32 %v3293_v54  ;;  %v4133_v7 = vmul.f32 -1.442695, %v4325_v59  ;;  %v4288_v59 = vadd.f32 %v5998_v51, %v5973_v3 }
 0x2b6   : > { %v5102_v60 = vpop.eup %5101  ;;  %v3294_v61 = vadd.f32 1.0, %v5100_v57  ;;  %5123 = vtanh.f32 %v4283_v50  ;;  %v4327_v16 = vadd.f32 %v3068_v56, %v5971_v63  ;;  %v4134_v21 = vmul.f32 -1.442695, %v4326_v4 }
 0x2b7   : > { %v5104_v1 = vpop.eup %5103 }
 0x2b8   : > { %v5106_v2 = vpop.eup %5105  ;;  %5125 = vrcp.f32 %v3294_v61  ;;  %v6005_v8 = vpop.f32.mrb[12].mxu0  ;;  %v4135_v30 = vmul.f32 -1.442695, %v4327_v16 }
 0x2b9   : > { %v5108_v5 = vpop.eup %5107  ;;  %v3295_v6 = vadd.f32 1.0, %v5106_v2  ;;  %5127 = vpow2.f32 %v4132_v58  ;;  %v3072_v9 = vpop.f32.mrb[12].mxu1 }
 0x2ba   : > { %v5110_v10 = vpop.eup %5109  ;;  %v3296_v12 = vadd.f32 1.0, %v5108_v5  ;;  %5129 = vtanh.f32 %v4284_v0  ;;  %v6007_v13 = vpop.f32.mrb[13].mxu0  ;;  %v4328_v26 = vadd.f32 %v3072_v9, %v5969_v62  ;;  %v4289_v9 = vadd.f32 %v6000_v55, %v5977_v11 }
 0x2bb   : > { %v3074_v14 = vpop.f32.mrb[13].mxu1  ;;  %v5112_v15 = vpop.eup %5111  ;;  %5131 = vrcp.f32 %v3295_v6  ;;  %v4290_v55 = vadd.f32 %v6005_v8, %v5973_v3 }
 0x2bc   : > { %v6010_v17 = vpop.f32.mrb[14].mxu0  ;;  %v3076_v18 = vpop.f32.mrb[14].mxu1  ;;  %5133 = vrcp.f32 %v3296_v12  ;;  %v3297_v20 = vadd.f32 1.0, %v5112_v15  ;;  %v4329_v36 = vadd.f32 %v3074_v14, %v5971_v63  ;;  %v4136_v33 = vmul.f32 -1.442695, %v4328_v26 }
 0x2bd   : > { %v5114_v19 = vpop.eup %5113  ;;  %v6012_v22 = vpop.f32.mrb[15].mxu0  ;;  %5135 = vpow2.f32 %v4133_v7  ;;  %v4330_v43 = vadd.f32 %v3076_v18, %v5969_v62 }
 0x2be   : > { %v3078_v23 = vpop.f32.mrb[15].mxu1  ;;  %v5116_v24 = vpop.eup %5115  ;;  %5137 = vrcp.f32 %v3297_v20  ;;  %v4137_v54 = vmul.f32 -1.442695, %v4329_v36 }
 0x2bf   : > { %v5118_v27 = vpop.eup %5117  ;;  %v3405_v28 = vmul.f32 %v5116_v24, %v5098_v53  ;;  %5139 = vpow2.f32 %v4134_v21  ;;  %v4138_v2 = vmul.f32 -1.442695, %v4330_v43 }
 0x2c0   : > { %v5120_v29 = vpop.eup %5119  ;;  %v3406_v31 = vmul.f32 %v5118_v27, %v5102_v60  ;;  %5141 = vtanh.f32 %v4285_v25  ;;  %v6020_v38 = vpop.f32.mrb[16].mxu0  ;;  %v4331_v60 = vadd.f32 %v3078_v23, %v5971_v63 }
 0x2c1   : > { %v5122_v32 = vpop.eup %5121  ;;  %v3298_v34 = vadd.f32 1.0, %v5120_v29  ;;  %v3082_v39 = vpop.f32.mrb[16].mxu1 }
 0x2c2   : > { %v5124_v37 = vpop.eup %5123  ;;  %v3407_v40 = vmul.f32 %v5122_v32, %v5104_v1  ;;  %v6022_v42 = vpop.f32.mrb[17].mxu0  ;;  %v4332_v51 = vadd.f32 %v3082_v39, %v5969_v62  ;;  %v4139_v16 = vmul.f32 -1.442695, %v4331_v60 }
 0x2c3   : > { %v5126_v41 = vpop.eup %5125  ;;  %5143 = vrcp.f32 %v3298_v34  ;;  %v3084_v44 = vpop.f32.mrb[17].mxu1 }
 0x2c4   : > { %v5128_v45 = vpop.eup %5127  ;;  %5145 = vpow2.f32 %v4135_v30  ;;  %v6027_v48 = vpop.f32.mrb[18].mxu0  ;;  %v3408_v50 = vmul.f32 %v5126_v41, %v5110_v10  ;;  %v3443_v0 = vpack.c.bf16 %v3407_v40, %v3405_v28  ;;  %v4333_v26 = vadd.f32 %v3084_v44, %v5971_v63 }
 0x2c5   : > { %v3086_v49 = vpop.f32.mrb[18].mxu1  ;;  %v5130_v52 = vpop.eup %5129  ;;  %5147 = vtanh.f32 %v4286_v35  ;;  %v3299_v53 = vadd.f32 1.0, %v5128_v45  ;;  %v4140_v30 = vmul.f32 -1.442695, %v4332_v51  ;;  %v4291_v35 = vadd.f32 %v6007_v13, %v5977_v11 }
 0x2c6   : > { %v6029_v56 = vpop.f32.mrb[19].mxu0  ;;  %v6031_v57 = vpop.f32.mrb[19].mxu1  ;;  %5149 = vpow2.f32 %v4136_v33  ;;  %v3444_v61 = vpack.c.bf16 %v3408_v50, %v3406_v31  ;;  %v4334_v36 = vadd.f32 %v3086_v49, %v5969_v62  ;;  %v4141_v40 = vmul.f32 -1.442695, %v4333_v26 }
 0x2c7   : > { %v5132_v58 = vpop.eup %5131  ;;  %5151 = vrcp.f32 %v3299_v53  ;;  %v4292_v13 = vadd.f32 %v6010_v17, %v5973_v3  ;;  %v4335_v49 = vadd.f32 %v6031_v57, %v5971_v63 }
 0x2c8   : > { %v5134_v47 = vpop.eup %5133  ;;  %5153 = vtanh.f32 %v4287_v46  ;;  %v3409_v5 = vmul.f32 %v5132_v58, %v5114_v19  ;;  %3630 = vmatprep.mubr.bf16.mxu0 %v3444_v61  ;;  %v6039_v10 = vpop.f32.mrb[20].mxu0 }
 0x2c9   : > { %v5136_v1 = vpop.eup %5135  ;;  %v3410_v4 = vmul.f32 %v5134_v47, %v5124_v37  ;;  %5155 = vpow2.f32 %v4137_v54  ;;  %3631 = vmatmul.mubr.bf16.vlgmr.msra.gmra.mrb[40].mxu0 %v3443_v0  ;;  %v3092_v12 = vpop.f32.mrb[20].mxu1 }
 0x2ca   : > { %v5138_v6 = vpop.eup %5137  ;;  %v3300_v7 = vadd.f32 1.0, %v5136_v1  ;;  %5157 = vtanh.f32 %v4288_v59  ;;  %v6041_v18 = vpop.f32.mrb[21].mxu0  ;;  %v4142_v59 = vmul.f32 -1.442695, %v4334_v36  ;;  %v4293_v1 = vadd.f32 %v6012_v22, %v5977_v11 }
 0x2cb   : > { %v3411_v14 = vmul.f32 %v5138_v6, %v5130_v52  ;;  %v5140_v15 = vpop.eup %5139  ;;  %v6043_v19 = vpop.f32.mrb[21].mxu1  ;;  %v4143_v6 = vmul.f32 -1.442695, %v4335_v49 }
 0x2cc   : > { %5159 = vrcp.f32 %v3300_v7  ;;  %v5142_v20 = vpop.eup %5141  ;;  %v3301_v21 = vadd.f32 1.0, %v5140_v15  ;;  %v6047_v23 = vpop.f32.mrb[22].mxu0  ;;  %v4337_v15 = vadd.f32 %v6043_v19, %v5971_v63  ;;  %v4295_v19 = vadd.f32 %v6022_v42, %v5977_v11 }
 0x2cd   : > { %5161 = vpow2.f32 %v4138_v2  ;;  %v6049_v24 = vpop.f32.mrb[22].mxu1  ;;  %v5144_v25 = vpop.eup %5143  ;;  %v3445_v37 = vpack.c.bf16 %v3411_v14, %v3409_v5  ;;  %v4336_v2 = vadd.f32 %v3092_v12, %v5969_v62  ;;  %v4294_v14 = vadd.f32 %v6020_v38, %v5973_v3 }
 0x2ce   : > { %5163 = vtanh.f32 %v4289_v9  ;;  %v6052_v27 = vpop.f32.mrb[23].mxu0  ;;  %v6054_v28 = vpop.f32.mrb[23].mxu1  ;;  %v3412_v8 = vmul.f32 %v5144_v25, %v5142_v20 }
 0x2cf   : > { %v5146_v29 = vpop.eup %5145  ;;  %5165 = vrcp.f32 %v3301_v21  ;;  %v4144_v12 = vmul.f32 -1.442695, %v4336_v2 }
 0x2d0   : > { %v5148_v31 = vpop.eup %5147  ;;  %v3302_v32 = vadd.f32 1.0, %v5146_v29  ;;  %5167 = vpow2.f32 %v4139_v16  ;;  %v3446_v41 = vpack.c.bf16 %v3412_v8, %v3410_v4  ;;  %v6059_v45 = vpop.f32.mrb[24].mxu0 }
 0x2d1   : > { %v5150_v34 = vpop.eup %5149  ;;  %5169 = vtanh.f32 %v4290_v55  ;;  %v6061_v46 = vpop.f32.mrb[24].mxu1 }
 0x2d2   : > { %v5152_v33 = vpop.eup %5151  ;;  %5171 = vrcp.f32 %v3302_v32  ;;  %v3303_v39 = vadd.f32 1.0, %v5150_v34  ;;  %3638 = vmatprep.mubr.bf16.mxu0 %v3446_v41  ;;  %v6069_v52 = vpop.f32.mrb[25].mxu0 }
 0x2d3   : > { %v5154_v44 = vpop.eup %5153  ;;  %5173 = vpow2.f32 %v4140_v30  ;;  %v6063_v43 = vmul.f32 %v5152_v33, %v5148_v31  ;;  %v6071_v53 = vpop.f32.mrb[25].mxu1  ;;  %3639 = vmatmul.mubr.bf16.gmra.mrb[44].mxu0 %v3445_v37  ;;  %v4338_v31 = vadd.f32 %v6049_v24, %v5969_v62  ;;  %v4145_v37 = vmul.f32 -1.442695, %v4337_v15 }
 0x2d4   : > { %v5156_v50 = vpop.eup %5155  ;;  %5175 = vrcp.f32 %v3303_v39  ;;  %v6073_v47 = vpop.f32.mrb[26].mxu0  ;;  %v4296_v24 = vadd.f32 %v6027_v48, %v5973_v3  ;;  %v4340_v48 = vadd.f32 %v6061_v46, %v5969_v62  ;;  %v4341_v15 = vadd.f32 %v6071_v53, %v5971_v63 }
 0x2d5   : > { %v5158_v54 = vpop.eup %5157  ;;  %5177 = vtanh.f32 %v4291_v35  ;;  %v3304_v58 = vadd.f32 1.0, %v5156_v50  ;;  %v6075_v60 = vpop.f32.mrb[26].mxu1  ;;  %v4146_v49 = vmul.f32 -1.442695, %v4338_v31 }
 0x2d6   : > { %v5160_v61 = vpop.eup %5159  ;;  %5179 = vpow2.f32 %v4141_v40  ;;  %v6077_v17 = vpop.f32.mrb[27].mxu0  ;;  %v4342_v53 = vadd.f32 %v6075_v60, %v5969_v62 }
 0x2d7   : > { %v6079_v0 = vpop.f32.mrb[27].mxu1  ;;  %v5162_v57 = vpop.eup %5161  ;;  %5181 = vrcp.f32 %v3304_v58  ;;  %v3414_v7 = vmul.f32 %v5160_v61, %v5154_v44  ;;  %v4339_v44 = vadd.f32 %v6054_v28, %v5971_v63  ;;  %v4297_v61 = vadd.f32 %v6029_v56, %v5977_v11 }
 0x2d8   : > { %v5164_v4 = vpop.eup %5163  ;;  %5183 = vtanh.f32 %v4292_v13  ;;  %v3305_v5 = vadd.f32 1.0, %v5162_v57  ;;  %v6088_v21 = vpop.f32.mrb[28].mxu0  ;;  %v4343_v60 = vadd.f32 %v6079_v0, %v5971_v63  ;;  %v4301_v0 = vadd.f32 %v6052_v27, %v5977_v11 }
 0x2d9   : > { %v5166_v9 = vpop.eup %5165  ;;  %5185 = vpow2.f32 %v4142_v59  ;;  %v6090_v55 = vpop.f32.mrb[28].mxu1 }
 0x2da   : > { %v5168_v51 = vpop.eup %5167  ;;  %5187 = vrcp.f32 %v3305_v5  ;;  %v3415_v16 = vmul.f32 %v5166_v9, %v5158_v54  ;;  %v6093_v29 = vpop.f32.mrb[29].mxu0 }
 0x2db   : > { %v5170_v20 = vpop.eup %5169  ;;  %5189 = vtanh.f32 %v4293_v1  ;;  %v3306_v22 = vadd.f32 1.0, %v5168_v51  ;;  %v6095_v30 = vpop.f32.mrb[29].mxu1 }
 0x2dc   : > { %v5172_v25 = vpop.eup %5171  ;;  %5191 = vpow2.f32 %v4143_v6  ;;  %v3447_v26 = vpack.c.bf16 %v3415_v16, %v6063_v43  ;;  %v6101_v8 = vpop.f32.mrb[30].mxu0 }
 0x2dd   : > { %v5174_v38 = vpop.eup %5173  ;;  %5193 = vrcp.f32 %v3306_v22  ;;  %v3416_v32 = vmul.f32 %v5172_v25, %v5164_v4  ;;  %v6103_v34 = vpop.f32.mrb[30].mxu1  ;;  %v4147_v4 = vmul.f32 -1.442695, %v4339_v44  ;;  %v4148_v25 = vmul.f32 -1.442695, %v4340_v48 }
 0x2de   : > { %v5176_v35 = vpop.eup %5175  ;;  %5195 = vtanh.f32 %v4294_v14  ;;  %v3307_v36 = vadd.f32 1.0, %v5174_v38  ;;  %v6105_v33 = vpop.f32.mrb[31].mxu0  ;;  %v4298_v14 = vadd.f32 %v6039_v10, %v5973_v3  ;;  %v4299_v10 = vadd.f32 %v6041_v18, %v5977_v11 }
 0x2df   : > { %v6107_v39 = vpop.f32.mrb[31].mxu1  ;;  %v5178_v40 = vpop.eup %5177  ;;  %5197 = vpow2.f32 %v4144_v12  ;;  %v3448_v41 = vpack.c.bf16 %v3416_v32, %v3414_v7  ;;  %v6113_v43 = vmul.f32 %v5176_v35, %v5170_v20  ;;  %v4300_v18 = vadd.f32 %v6047_v23, %v5973_v3 }
 0x2e0   : > { %v5180_v42 = vpop.eup %5179  ;;  %5199 = vrcp.f32 %v3307_v36  ;;  %v6119_v28 = vpop.f32.mrb[32].mxu0  ;;  %v4149_v36 = vmul.f32 -1.442695, %v4341_v15 }
 0x2e1   : > { %v5182_v50 = vpop.eup %5181  ;;  %5201 = vtanh.f32 %v4295_v19  ;;  %v3308_v13 = vadd.f32 1.0, %v5180_v42  ;;  %3646 = vmatprep.mubr.bf16.mxu0 %v3448_v41  ;;  %v6121_v57 = vpop.f32.mrb[32].mxu1 }
 0x2e2   : > { %v5184_v54 = vpop.eup %5183  ;;  %5203 = vpow2.f32 %v4145_v37  ;;  %3647 = vmatmul.mubr.bf16.gmra.mrb[48].mxu0 %v3447_v26  ;;  %v3418_v58 = vmul.f32 %v5182_v50, %v5178_v40  ;;  %v6123_v5 = vpop.f32.mrb[33].mxu0 }
 0x2e3   : > { %v5186_v59 = vpop.eup %5185  ;;  %5205 = vrcp.f32 %v3308_v13  ;;  %v6125_v6 = vpop.f32.mrb[33].mxu1 }
 0x2e4   : > { %v5188_v1 = vpop.eup %5187  ;;  %5207 = vtanh.f32 %v4296_v24  ;;  %v3309_v2 = vadd.f32 1.0, %v5186_v59  ;;  %v6127_v51 = vpop.f32.mrb[34].mxu0 }
 0x2e5   : > { %v5190_v7 = vpop.eup %5189  ;;  %5209 = vpow2.f32 %v4146_v49  ;;  %v3419_v9 = vmul.f32 %v5188_v1, %v5184_v54  ;;  %v6129_v56 = vpop.f32.mrb[34].mxu1  ;;  %v4150_v54 = vmul.f32 -1.442695, %v4342_v53  ;;  %v4303_v53 = vadd.f32 %v6069_v52, %v5977_v11 }
 0x2e6   : > { %v5192_v46 = vpop.eup %5191  ;;  %5211 = vrcp.f32 %v3309_v2  ;;  %v6135_v16 = vpop.f32.mrb[35].mxu0 }
 0x2e7   : > { %v6137_v20 = vpop.f32.mrb[35].mxu1  ;;  %v5194_v22 = vpop.eup %5193  ;;  %5213 = vtanh.f32 %v4297_v61  ;;  %v3310_v12 = vadd.f32 1.0, %v5192_v46  ;;  %v3449_v26 = vpack.c.bf16 %v3419_v9, %v6113_v43  ;;  %v4151_v46 = vmul.f32 -1.442695, %v4343_v60 }
 0x2e8   : > { %v5196_v38 = vpop.eup %5195  ;;  %5215 = vpow2.f32 %v4147_v4  ;;  %v3420_v19 = vmul.f32 %v5194_v22, %v5190_v7  ;;  %v6146_v42 = vpop.f32.mrb[36].mxu0  ;;  %v4344_v4 = vadd.f32 %v6090_v55, %v5969_v62 }
 0x2e9   : > { %v5198_v31 = vpop.eup %5197  ;;  %5217 = vrcp.f32 %v3310_v12  ;;  %v6148_v24 = vpop.f32.mrb[36].mxu1  ;;  %v4302_v12 = vadd.f32 %v6059_v45, %v5973_v3  ;;  %v4346_v45 = vadd.f32 %v6103_v34, %v5969_v62 }
 0x2ea   : > { %v5200_v32 = vpop.eup %5199  ;;  %5219 = vtanh.f32 %v4298_v14  ;;  %v3311_v35 = vadd.f32 1.0, %v5198_v31  ;;  %v3450_v37 = vpack.c.bf16 %v3420_v19, %v3418_v58  ;;  %v6154_v43 = vpop.f32.mrb[37].mxu0 }
 0x2eb   : > { %v5202_v40 = vpop.eup %5201  ;;  %5221 = vpow2.f32 %v4148_v25  ;;  %v6144_v41 = vmul.f32 %v5200_v32, %v5196_v38  ;;  %v6156_v50 = vpop.f32.mrb[37].mxu1  ;;  %v4345_v25 = vadd.f32 %v6095_v30, %v5971_v63  ;;  %v4152_v38 = vmul.f32 -1.442695, %v4344_v4 }
 0x2ec   : > { %v5204_v44 = vpop.eup %5203  ;;  %5223 = vrcp.f32 %v3311_v35  ;;  %3654 = vmatprep.mubr.bf16.mxu0 %v3450_v37  ;;  %v2612_v58 = vpop.f32.mrb[38].mxu0  ;;  %v4154_v60 = vmul.f32 -1.442695, %v4346_v45 }
 0x2ed   : > { %v5206_v13 = vpop.eup %5205  ;;  %5225 = vtanh.f32 %v4299_v10  ;;  %v3312_v49 = vadd.f32 1.0, %v5204_v44  ;;  %3655 = vmatmul.mubr.bf16.gmra.mrb[52].mxu0 %v3449_v26  ;;  %v3136_v59 = vpop.f32.mrb[38].mxu1  ;;  %v4153_v35 = vmul.f32 -1.442695, %v4345_v25  ;;  %v4304_v44 = vadd.f32 %v6073_v47, %v5973_v3 }
 0x2ee   : > { %v5208_v61 = vpop.eup %5207  ;;  %5227 = vpow2.f32 %v4149_v36  ;;  %v3422_v48 = vmul.f32 %v5206_v13, %v5202_v40  ;;  %v2613_v1 = vpop.f32.mrb[39].mxu0  ;;  %v4305_v58 = vadd.f32 %v6077_v17, %v5977_v11  ;;  %v4348_v47 = vadd.f32 %v6121_v57, %v5969_v62 }
 0x2ef   : > { %v3137_v23 = vpop.f32.mrb[39].mxu1  ;;  %v5210_v2 = vpop.eup %5209  ;;  %5229 = vrcp.f32 %v3312_v49 }
 0x2f0   : > { %v5212_v7 = vpop.eup %5211  ;;  %5231 = vtanh.f32 %v4300_v18  ;;  %v3313_v9 = vadd.f32 1.0, %v5210_v2  ;;  %v4347_v18 = vadd.f32 %v6107_v39, %v5971_v63  ;;  %v4306_v2 = vadd.f32 %v6088_v21, %v5973_v3 }
 0x2f1   : > { %v5214_v14 = vpop.eup %5213  ;;  %5233 = vpow2.f32 %v4150_v54  ;;  %v3423_v15 = vmul.f32 %v5212_v7, %v5208_v61  ;;  %v4156_v7 = vmul.f32 -1.442695, %v4348_v47 }
 0x2f2   : > { %v5216_v22 = vpop.eup %5215  ;;  %5235 = vrcp.f32 %v3313_v9  ;;  %v4155_v61 = vmul.f32 -1.442695, %v4347_v18 }
 0x2f3   : > { %v5218_v26 = vpop.eup %5217  ;;  %5237 = vtanh.f32 %v4301_v0  ;;  %v3314_v27 = vadd.f32 1.0, %v5216_v22  ;;  %v3451_v55 = vpack.c.bf16 %v3423_v15, %v6144_v41  ;;  %v4349_v0 = vadd.f32 %v6125_v6, %v5971_v63 }
 0x2f4   : > { %v5220_v19 = vpop.eup %5219  ;;  %5239 = vpow2.f32 %v4151_v46  ;;  %v3424_v31 = vmul.f32 %v5218_v26, %v5214_v14  ;;  %v4307_v15 = vadd.f32 %v6093_v29, %v5977_v11  ;;  %v4350_v22 = vadd.f32 %v6129_v56, %v5969_v62 }
 0x2f5   : > { %v5222_v10 = vpop.eup %5221  ;;  %5241 = vrcp.f32 %v3314_v27  ;;  %v4157_v6 = vmul.f32 -1.442695, %v4349_v0  ;;  %v4313_v0 = vadd.f32 %v6135_v16, %v5977_v11  ;;  %v4315_v16 = vadd.f32 %v6154_v43, %v5977_v11 }
 0x2f6   : > { %v5224_v32 = vpop.eup %5223  ;;  %5243 = vtanh.f32 %v4302_v12  ;;  %v3315_v30 = vadd.f32 1.0, %v5222_v10  ;;  %v3452_v36 = vpack.c.bf16 %v3424_v31, %v3422_v48  ;;  %v4158_v31 = vmul.f32 -1.442695, %v4350_v22 }
 0x2f7   : > { %v5226_v37 = vpop.eup %5225  ;;  %5245 = vpow2.f32 %v4152_v38  ;;  %v3425_v40 = vmul.f32 %v5224_v32, %v5220_v19  ;;  %v4351_v19 = vadd.f32 %v6137_v20, %v5971_v63  ;;  %v4309_v32 = vadd.f32 %v6105_v33, %v5977_v11 }
 0x2f8   : > { %v5228_v41 = vpop.eup %5227  ;;  %5247 = vrcp.f32 %v3315_v30  ;;  %3662 = vmatprep.mubr.bf16.mxu0 %v3452_v36 }
 0x2f9   : > { %v5230_v52 = vpop.eup %5229  ;;  %5249 = vtanh.f32 %v4303_v53  ;;  %v3316_v34 = vadd.f32 1.0, %v5228_v41  ;;  %3663 = vmatmul.mubr.bf16.gmra.mrb[56].mxu0 %v3451_v55  ;;  %v4308_v55 = vadd.f32 %v6101_v8, %v5973_v3  ;;  %v4352_v8 = vadd.f32 %v6148_v24, %v5969_v62 }
 0x2fa   : > { %v5232_v13 = vpop.eup %5231  ;;  %5251 = vpow2.f32 %v4153_v35  ;;  %v3426_v49 = vmul.f32 %v5230_v52, %v5226_v37  ;;  %v4159_v35 = vmul.f32 -1.442695, %v4351_v19  ;;  %v4310_v41 = vadd.f32 %v6119_v28, %v5973_v3 }
 0x2fb   : > { %v5234_v54 = vpop.eup %5233  ;;  %5253 = vrcp.f32 %v3316_v34  ;;  %v4160_v52 = vmul.f32 -1.442695, %v4352_v8 }
 0x2fc   : > { %v5236_v59 = vpop.eup %5235  ;;  %5255 = vtanh.f32 %v4304_v44  ;;  %v3317_v39 = vadd.f32 1.0, %v5234_v54  ;;  %v4353_v44 = vadd.f32 %v6156_v50, %v5971_v63 }
 0x2fd   : > { %v5238_v48 = vpop.eup %5237  ;;  %5257 = vpow2.f32 %v4154_v60  ;;  %v3427_v1 = vmul.f32 %v5236_v59, %v5232_v13  ;;  %v4311_v13 = vadd.f32 %v6123_v5, %v5977_v11 }
 0x2fe   : > { %v5240_v23 = vpop.eup %5239  ;;  %5259 = vrcp.f32 %v3317_v39  ;;  %v4161_v28 = vmul.f32 -1.442695, %v4353_v44 }
 0x2ff   : > { %v5242_v4 = vpop.eup %5241  ;;  %5261 = vtanh.f32 %v4305_v58  ;;  %v3318_v17 = vadd.f32 1.0, %v5240_v23  ;;  %v3453_v57 = vpack.c.bf16 %v3427_v1, %v3425_v40 }
 0x300   : > { %v5244_v9 = vpop.eup %5243  ;;  %5263 = vpow2.f32 %v4155_v61  ;;  %v3428_v46 = vmul.f32 %v5242_v4, %v5238_v48  ;;  %v4312_v61 = vadd.f32 %v6127_v51, %v5973_v3  ;;  %v4314_v51 = vadd.f32 %v6146_v42, %v5973_v3 }
 0x301   : > { %v5246_v14 = vpop.eup %5245  ;;  %5265 = vrcp.f32 %v3318_v17 }
 0x302   : > { %v5248_v21 = vpop.eup %5247  ;;  %5267 = vtanh.f32 %v4306_v2  ;;  %v3319_v12 = vadd.f32 1.0, %v5246_v14  ;;  %v3454_v25 = vpack.c.bf16 %v3428_v46, %v3426_v49 }
 0x303   : > { %v5250_v26 = vpop.eup %5249  ;;  %5269 = vpow2.f32 %v4156_v7  ;;  %v3429_v27 = vmul.f32 %v5248_v21, %v5244_v9 }
 0x304   : > { %v5252_v38 = vpop.eup %5251  ;;  %5271 = vrcp.f32 %v3319_v12  ;;  %3670 = vmatprep.mubr.bf16.mxu1 %v3454_v25 }
 0x305   : > { %v5254_v29 = vpop.eup %5253  ;;  %5273 = vtanh.f32 %v4307_v15  ;;  %v3320_v56 = vadd.f32 1.0, %v5252_v38  ;;  %3671 = vmatmul.mubr.bf16.vlgmr.msra.gmra.mrb[40].mxu1 %v3453_v57 }
 0x306   : > { %v5256_v10 = vpop.eup %5255  ;;  %5275 = vpow2.f32 %v4157_v6  ;;  %v3430_v53 = vmul.f32 %v5254_v29, %v5250_v26 }
 0x307   : > { %v5258_v45 = vpop.eup %5257  ;;  %5277 = vrcp.f32 %v3320_v56 }
 0x308   : > { %v5260_v30 = vpop.eup %5259  ;;  %5279 = vtanh.f32 %v4308_v55  ;;  %v3321_v20 = vadd.f32 1.0, %v5258_v45 }
 0x309   : > { %v5262_v36 = vpop.eup %5261  ;;  %5281 = vpow2.f32 %v4158_v31  ;;  %v3431_v37 = vmul.f32 %v5260_v30, %v5256_v10 }
 0x30a   : > { %v5264_v40 = vpop.eup %5263  ;;  %5283 = vrcp.f32 %v3321_v20 }
 0x30b   : > { %v5266_v18 = vpop.eup %5265  ;;  %5285 = vtanh.f32 %v4309_v32  ;;  %v3322_v33 = vadd.f32 1.0, %v5264_v40  ;;  %v3455_v62 = vpack.c.bf16 %v3431_v37, %v3429_v27  ;;  %v6210_v40 = vld [vmem:[#allocation10] ss:$0 sm:$0xff] }
 0x30c   : > { %v5268_v24 = vpop.eup %5267  ;;  %5287 = vpow2.f32 %v4159_v35  ;;  %v3432_v34 = vmul.f32 %v5266_v18, %v5262_v36 }
 0x30d   : > { %v5270_v60 = vpop.eup %5269  ;;  %5289 = vrcp.f32 %v3322_v33 }
 0x30e   : > { %v5272_v49 = vpop.eup %5271  ;;  %5291 = vtanh.f32 %v4310_v41  ;;  %v3323_v54 = vadd.f32 1.0, %v5270_v60  ;;  %v3456_v58 = vpack.c.bf16 %v3432_v34, %v3430_v53 }
 0x30f   : > { %v5274_v47 = vpop.eup %5273  ;;  %5293 = vpow2.f32 %v4160_v52  ;;  %v3433_v63 = vmul.f32 %v5272_v49, %v5268_v24 }
 0x310   : > { %v5276_v50 = vpop.eup %5275  ;;  %5295 = vrcp.f32 %v3323_v54  ;;  %3678 = vmatprep.mubr.bf16.mxu1 %v3456_v58 }
 0x311   : > { %v5278_v59 = vpop.eup %5277  ;;  %5297 = vtanh.f32 %v4311_v13  ;;  %v3324_v39 = vadd.f32 1.0, %v5276_v50  ;;  %3679 = vmatmul.mubr.bf16.gmra.mrb[44].mxu1 %v3455_v62 }
 0x312   : > { %v5280_v48 = vpop.eup %5279  ;;  %5299 = vpow2.f32 %v4161_v28  ;;  %v3434_v5 = vmul.f32 %v5278_v59, %v5274_v47 }
 0x313   : > { %v5282_v1 = vpop.eup %5281  ;;  %5301 = vrcp.f32 %v3324_v39 }
 0x314   : > { %v5284_v23 = vpop.eup %5283  ;;  %v3325_v2 = vadd.f32 1.0, %v5282_v1  ;;  %5303 = vtanh.f32 %v4312_v61 }
 0x315   : > { %v5286_v4 = vpop.eup %5285  ;;  %v3435_v17 = vmul.f32 %v5284_v23, %v5280_v48 }
 0x316   : > { %v5288_v7 = vpop.eup %5287  ;;  %5305 = vrcp.f32 %v3325_v2 }
 0x317   : > { %v5290_v57 = vpop.eup %5289  ;;  %v3326_v9 = vadd.f32 1.0, %v5288_v7  ;;  %v3457_v46 = vpack.c.bf16 %v3435_v17, %v3433_v63  ;;  %5307 = vtanh.f32 %v4313_v0 }
 0x318   : > { %v5292_v14 = vpop.eup %5291  ;;  %v3436_v15 = vmul.f32 %v5290_v57, %v5286_v4 }
 0x319   : > { %v5294_v22 = vpop.eup %5293  ;;  %5309 = vrcp.f32 %v3326_v9 }
 0x31a   : > { %v5296_v21 = vpop.eup %5295  ;;  %v3327_v12 = vadd.f32 1.0, %v5294_v22  ;;  %v3458_v6 = vpack.c.bf16 %v3436_v15, %v3434_v5  ;;  %5311 = vtanh.f32 %v4314_v51 }
 0x31b   : > { %v5298_v25 = vpop.eup %5297  ;;  %v3437_v26 = vmul.f32 %v5296_v21, %v5292_v14 }
 0x31c   : > { %v5300_v27 = vpop.eup %5299  ;;  %5313 = vrcp.f32 %v3327_v12  ;;  %3686 = vmatprep.mubr.bf16.mxu1 %v3458_v6 }
 0x31d   : > { %v5302_v38 = vpop.eup %5301  ;;  %v3328_v3 = vadd.f32 1.0, %v5300_v27  ;;  %3687 = vmatmul.mubr.bf16.gmra.mrb[48].mxu1 %v3457_v46  ;;  %5315 = vtanh.f32 %v4315_v16 }
 0x31e   : > { %v3438_v42 = vmul.f32 %v5302_v38, %v5298_v25  ;;  %v5304_v55 = vpop.eup %5303 }
 0x31f   : > { %5317 = vrcp.f32 %v3328_v3 }
 0x320   : > { %v5306_v19 = vpop.eup %5305 }
 0x321   : > { %v3439_v29 = vmul.f32 %v5306_v19, %v5304_v55  ;;  %v5308_v56 = vpop.eup %5307 }
 0x323   : > { %v5310_v31 = vpop.eup %5309  ;;  %v3459_v11 = vpack.c.bf16 %v3439_v29, %v3437_v26 }
 0x324   : > { %v3440_v43 = vmul.f32 %v5310_v31, %v5308_v56  ;;  %v5312_v10 = vpop.eup %5311 }
 0x326   : > { %v5314_v53 = vpop.eup %5313  ;;  %v3460_v45 = vpack.c.bf16 %v3440_v43, %v3438_v42 }
 0x327   : > { %v3441_v32 = vmul.f32 %v5314_v53, %v5312_v10  ;;  %v5316_v8 = vpop.eup %5315 }
 0x328   : > { %3694 = vmatprep.mubr.bf16.mxu1 %v3460_v45 }
 0x329   : > { %v5318_v30 = vpop.eup %5317  ;;  %3695 = vmatmul.mubr.bf16.gmra.mrb[52].mxu1 %v3459_v11  ;;  %v3461_v36 = vpack.c.bf16 %v3441_v32, %v3441_v32 }
 0x32a   : > { %v3442_v20 = vmul.f32 %v5318_v30, %v5316_v8 }
 0x32c   : > { %v3462_v35 = vpack.c.bf16 %v3442_v20, %v3442_v20 }
 0x32e   : > { %3702 = vmatprep.mubr.bf16.mxu1 %v3462_v35 }
 0x331   : > { %3703 = vmatmul.mubr.bf16.gmra.mrb[56].mxu1 %v3461_v36 }
 0x39c   : > { %v4202_v37 = vpop.f32.mrb[40].mxu0 }
 0x39d   : > { %v4203_v41 = vpop.f32.mrb[41].mxu0 }
 0x39e   : > { %v4204_v44 = vadd.f32 %v4203_v41, %v4202_v37  ;;  %v4205_v18 = vpop.f32.mrb[42].mxu0 }
 0x39f   : > { %v4206_v33 = vpop.f32.mrb[43].mxu0 }
 0x3a0   : > { %v3633_v52 = vadd.f32 %v4204_v44, %v6210_v40  ;;  %v4207_v62 = vadd.f32 %v4206_v33, %v4205_v18 }
 0x3a2   : > { %3710 = vst [vmem:[%s6213_s26] sm:$0xff] %v3633_v52  ;;  %v3636_v24 = vadd.f32 %v4207_v62, %v6210_v40 }
 0x3a4   : > { %3711 = vst [vmem:[%s6213_s26 + $0x8] sm:$0xff] %v3636_v24 }
 0x3a6   : > { %v4208_v34 = vpop.f32.mrb[44].mxu0 }
 0x3a7   : > { %v4209_v60 = vpop.f32.mrb[45].mxu0 }
 0x3a8   : > { %v4210_v13 = vadd.f32 %v4209_v60, %v4208_v34  ;;  %v4211_v49 = vpop.f32.mrb[46].mxu0 }
 0x3a9   : > { %v4212_v54 = vpop.f32.mrb[47].mxu0 }
 0x3aa   : > { %v3641_v28 = vadd.f32 %v4210_v13, %v6210_v40  ;;  %v4213_v58 = vadd.f32 %v4212_v54, %v4211_v49 }
 0x3ac   : > { %3712 = vst [vmem:[%s6213_s26 + $0x10] sm:$0xff] %v3641_v28  ;;  %v3644_v47 = vadd.f32 %v4213_v58, %v6210_v40 }
 0x3ae   : > { %3713 = vst [vmem:[%s6213_s26 + $0x18] sm:$0xff] %v3644_v47 }
 0x3b5   : > { %v4214_v63 = vpop.f32.mrb[48].mxu0 }
 0x3b6   : > { %v4215_v50 = vpop.f32.mrb[49].mxu0 }
 0x3b7   : > { %v4216_v59 = vadd.f32 %v4215_v50, %v4214_v63  ;;  %v4217_v39 = vpop.f32.mrb[50].mxu0 }
 0x3b8   : > { %v4218_v61 = vpop.f32.mrb[51].mxu0 }
 0x3b9   : > { %v3649_v48 = vadd.f32 %v4216_v59, %v6210_v40  ;;  %v4219_v5 = vadd.f32 %v4218_v61, %v4217_v39 }
 0x3bb   : > { %3714 = vst [vmem:[%s6213_s26 + $0x20] sm:$0xff] %v3649_v48  ;;  %v3652_v1 = vadd.f32 %v4219_v5, %v6210_v40 }
 0x3bd   : > { %3715 = vst [vmem:[%s6213_s26 + $0x28] sm:$0xff] %v3652_v1 }
 0x3c0   : > { %v4220_v23 = vpop.f32.mrb[52].mxu0 }
 0x3c1   : > { %v4221_v2 = vpop.f32.mrb[53].mxu0 }
 0x3c2   : > { %v4222_v0 = vadd.f32 %v4221_v2, %v4220_v23  ;;  %v4223_v4 = vpop.f32.mrb[54].mxu0 }
 0x3c3   : > { %v4224_v17 = vpop.f32.mrb[55].mxu0 }
 0x3c4   : > { %v3657_v7 = vadd.f32 %v4222_v0, %v6210_v40  ;;  %v4225_v57 = vadd.f32 %v4224_v17, %v4223_v4 }
 0x3c6   : > { %3716 = vst [vmem:[%s6213_s26 + $0x30] sm:$0xff] %v3657_v7  ;;  %v3660_v9 = vadd.f32 %v4225_v57, %v6210_v40 }
 0x3c8   : > { %3717 = vst [vmem:[%s6213_s26 + $0x38] sm:$0xff] %v3660_v9 }
 0x3cc   : > { %v4226_v51 = vpop.f32.mrb[56].mxu0 }
 0x3cd   : > { %v4227_v46 = vpop.f32.mrb[57].mxu0 }
 0x3ce   : > { %v4228_v14 = vadd.f32 %v4227_v46, %v4226_v51  ;;  %v4229_v15 = vpop.f32.mrb[58].mxu0 }
 0x3cf   : > { %v4230_v22 = vpop.f32.mrb[59].mxu0 }
 0x3d0   : > { %v3665_v21 = vadd.f32 %v4228_v14, %v6210_v40  ;;  %v4231_v12 = vadd.f32 %v4230_v22, %v4229_v15 }
 0x3d2   : > { %3718 = vst [vmem:[%s6213_s26 + $0x40] sm:$0xff] %v3665_v21  ;;  %v3668_v16 = vadd.f32 %v4231_v12, %v6210_v40 }
 0x3d4   : > { %3719 = vst [vmem:[%s6213_s26 + $0x48] sm:$0xff] %v3668_v16 }
 0x3d8   : > { %v4232_v6 = vpop.f32.mrb[40].mxu1 }
 0x3d9   : > { %v4233_v25 = vpop.f32.mrb[41].mxu1 }
 0x3da   : > { %v4234_v26 = vadd.f32 %v4233_v25, %v4232_v6  ;;  %v4235_v27 = vpop.f32.mrb[42].mxu1 }
 0x3db   : > { %v4236_v38 = vpop.f32.mrb[43].mxu1 }
 0x3dc   : > { %v3673_v3 = vadd.f32 %v4234_v26, %v6210_v40  ;;  %v4237_v42 = vadd.f32 %v4236_v38, %v4235_v27 }
 0x3de   : > { %3720 = vst [vmem:[%s6213_s26 + $0x50] sm:$0xff] %v3673_v3  ;;  %v3676_v55 = vadd.f32 %v4237_v42, %v6210_v40 }
 0x3e0   : > { %3721 = vst [vmem:[%s6213_s26 + $0x58] sm:$0xff] %v3676_v55 }
 0x3e4   : > { %v4238_v19 = vpop.f32.mrb[44].mxu1 }
 0x3e5   : > { %v4239_v29 = vpop.f32.mrb[45].mxu1 }
 0x3e6   : > { %v4240_v56 = vadd.f32 %v4239_v29, %v4238_v19  ;;  %v4241_v31 = vpop.f32.mrb[46].mxu1 }
 0x3e7   : > { %v4242_v11 = vpop.f32.mrb[47].mxu1 }
 0x3e8   : > { %v3681_v43 = vadd.f32 %v4240_v56, %v6210_v40  ;;  %v4243_v10 = vadd.f32 %v4242_v11, %v4241_v31 }
 0x3ea   : > { %3722 = vst [vmem:[%s6213_s26 + $0x60] sm:$0xff] %v3681_v43  ;;  %v3684_v53 = vadd.f32 %v4243_v10, %v6210_v40 }
 0x3ec   : > { %3723 = vst [vmem:[%s6213_s26 + $0x68] sm:$0xff] %v3684_v53 }
 0x3f0   : > { %v4244_v45 = vpop.f32.mrb[48].mxu1 }
 0x3f1   : > { %v4245_v32 = vpop.f32.mrb[49].mxu1 }
 0x3f2   : > { %v4246_v8 = vadd.f32 %v4245_v32, %v4244_v45  ;;  %v4247_v30 = vpop.f32.mrb[50].mxu1 }
 0x3f3   : > { %v4248_v20 = vpop.f32.mrb[51].mxu1 }
 0x3f4   : > { %v3689_v35 = vadd.f32 %v4246_v8, %v6210_v40  ;;  %v4249_v36 = vadd.f32 %v4248_v20, %v4247_v30 }
 0x3f6   : > { %3724 = vst [vmem:[%s6213_s26 + $0x70] sm:$0xff] %v3689_v35  ;;  %v3692_v37 = vadd.f32 %v4249_v36, %v6210_v40 }
 0x3f8   : > { %3725 = vst [vmem:[%s6213_s26 + $0x78] sm:$0xff] %v3692_v37 }
 0x3fc   : > { %v4250_v41 = vpop.f32.mrb[52].mxu1 }
 0x3fd   : > { %v4251_v44 = vpop.f32.mrb[53].mxu1 }
 0x3fe   : > { %v4252_v18 = vadd.f32 %v4251_v44, %v4250_v41  ;;  %v4253_v33 = vpop.f32.mrb[54].mxu1 }
 0x3ff   : > { %v4254_v52 = vpop.f32.mrb[55].mxu1 }
 0x400   : > { %v3697_v62 = vadd.f32 %v4252_v18, %v6210_v40  ;;  %v4255_v24 = vadd.f32 %v4254_v52, %v4253_v33 }
 0x402   : > { %3726 = vst [vmem:[%s6213_s26 + $0x80] sm:$0xff] %v3697_v62  ;;  %v3700_v34 = vadd.f32 %v4255_v24, %v6210_v40 }
 0x404   : > { %3727 = vst [vmem:[%s6213_s26 + $0x88] sm:$0xff] %v3700_v34  ;;  %v4256_v60 = vpop.f32.mrb[56].mxu1 }
 0x405   : > { %v4257_v13 = vpop.f32.mrb[57].mxu1 }
 0x406   : > { %v4258_v49 = vadd.f32 %v4257_v13, %v4256_v60  ;;  %v4259_v54 = vpop.f32.mrb[58].mxu1 }
 0x407   : > { %v4260_v28 = vpop.f32.mrb[59].mxu1 }
 0x408   : > { %v3705_v58 = vadd.f32 %v4258_v49, %v6210_v40 }
 0x40a   : > { %3728 = vst [vmem:[%s6213_s26 + $0x90] sm:$0xff] %v3705_v58 }
 0x40b   : > { %5474 = shalt.err (!%p5471_p13)
}
 0x40c   : > { %s5475_s15 = scalar_lea.hbm %s6255_s6, 2432  ;;  %s5479_s11 = scalar_lea.hbm %s6308_s5, 4864 }
 0x40d   : > { %p5476_p9 = scmp.ne.s32.totalorder %s6255_s6, %s5475_s15  ;;  %p5480_p6 = scmp.lt.u32.totalorder %s6255_s6, %s6308_s5 }
 0x40e   : > { %p5481_p10 = scmp.lt.u32.totalorder %s5479_s11, %s5475_s15  ;;  %p5483_p4 = scmp.lt.u32.totalorder %s5475_s15, %s6255_s6 }
 0x40f   : > { %p5477_p0 = pnand %p5476_p9, %p5749_p8 }
 0x410   : > { %p5482_p3 = por %p5481_p10, %p5480_p6 }
 0x411   : > { %p5478_p11 = pneg %p5477_p0 }
 0x412   : > { %p5484_p5 = por %p5483_p4, %p5482_p3 }
 0x414   : > { %p5485_p7 = pnand %p5484_p5, %p5478_p11 }
 0x416   : > { %5488 = shalt.err (!%p5485_p7)
}
 0x417   : > { %s5548_s14 = smov 128   ;;  %s5549_s13 = smov 8  }
 0x418   : > { %4615 = dma.vmem_to_hbm [thread:$0]  (%p5749_p8), %s6257_s9, 2432, %s6255_s6, %s3730_s22, %s5548_s14, %s5548_s14, %s5549_s13  }
 0x419 PF: > { %s3758_s28 = sand.u32 1, %s5523_s18   ;;  %p6326_p12 = scmp.ne.s32.totalorder %s6313_s25, 0 }
 0x41a   : > { %p6327_p2 = scmp.ge.s32.totalorder %s5535_s21, 2  ;;  %s3759_s30 = scalar_lea.sflag [#allocation4], %s3758_s28 }
 0x41c   : > { %p4635_p1 = pnand %p6327_p2, %p6326_p12 }
 0x41e   : > { %5518 = dma.done.wait (!%p4635_p1), %s3759_s30, 2432  }
 0x41f   : > { %5520 = vsyncadd (!%p4635_p1), %s3759_s30, 4294964864  ;;  %p20_p13 = scmp.ge.s32.totalorder %s5736_s12, 4   ;;  %s6328_s18 = smov %s5527_s19 }
 0x420   : > { %s6329_s19 = smov %s5531_s20  ;;  %s6330_s20 = smov %s5745_s17 }
 0x421   : > { %s6331_s21 = smov %s5736_s12  ;;  %22 = sbr.rel (!%p20_p13) target bundleno = 7 (0x7), region = 101 }
 0x428   :  { %3764 = vsyncpa [#allocation3], 1 }
 0x429   :  { %3766 = vsyncpa [#allocation3 + $0x1], 1 }
 0x42a   :  { %3767 = vsyncpa [#allocation6], 1 }
 0x42b   :  { %3768 = vsyncpa [#allocation9], 1 }
 0x42c   :  { %3769 = vsyncpa [#allocation4], 1 }
 0x42d   :  { %3771 = vsyncpa [#allocation4 + $0x1], 1 }

</bundles_post_ra>
